<compile_context>
chip_gen: v7x
topology: tpu7x:2x2x1
jax: 0.10.0
libtpu: 0.0.40
codegen_flags: <defaults>
</compile_context>

<pallas_src>
import jax
import jax.numpy as jnp
from jax.experimental import pallas as pl
from jax.experimental.pallas import tpu as pltpu

# ---------------- small BERT config (synthetic, deterministic) ----------------
VOCAB = 100       # vocab size (synthetic)
MAX_POS = 16      # max position embeddings
TYPE_VOCAB = 2
H = 32            # hidden size
NH = 4            # attention heads
HD = H // NH      # head dim
I = 64            # intermediate (FFN) size
L = 2             # encoder layers
EPS = 1e-12       # BERT LayerNorm eps

B = 2             # batch
S = 8             # sequence length
BS = B * S        # batch*seq folded into the matmul M dimension
NEG = -10000.0    # HF-style additive mask value


# ---------------- in-kernel helpers ----------------
def _ln(x, g, b):
    mu = jnp.mean(x, axis=-1, keepdims=True)
    var = jnp.mean((x - mu) ** 2, axis=-1, keepdims=True)
    return (x - mu) * jax.lax.rsqrt(var + EPS) * g + b


def _gelu(x):
    # TODO(synk): HF BERT uses exact erf-GELU; tanh approximation used here
    # (erf lowering in Mosaic is not guaranteed).
    c = jnp.float32(0.7978845608028654)  # sqrt(2/pi)
    return 0.5 * x * (1.0 + jnp.tanh(c * (x + 0.044715 * x * x * x)))


def _split_heads(t):
    # (BS, H) -> (NH, BS, HD) via static lane slices + stack: pure data movement,
    # no per-head matmuls.
    return jnp.stack([t[:, n * HD:(n + 1) * HD] for n in range(NH)], axis=0)


def _merge_heads(t):
    # (NH, BS, HD) -> (BS, H)
    return jnp.concatenate([t[n] for n in range(NH)], axis=-1)


# ---------------- fused forward kernel (single invocation, no grid) ----------------
def fused_bert_kernel(emb_ref, mask_ref, sel_ref, eg_ref, eb_ref,
                      wqkv_ref, bqkv_ref, wo_ref, bo_ref,
                      l1g_ref, l1b_ref, w1_ref, b1_ref, w2_ref, b2_ref,
                      l2g_ref, l2b_ref, pw_ref, pb_ref,
                      out_ref):
    # ---- embedding LayerNorm (once) ----
    x = _ln(emb_ref[...].astype(jnp.float32), eg_ref[...], eb_ref[...])   # (BS, H) f32

    # Loop-invariant additive mask, built once in the wrapper.
    add_mask = mask_ref[...]                                              # (BS, BS) f32
    scale = jnp.float32(1.0 / (HD ** 0.5))

    # ---- encoder layers: unrolled in-kernel loop over the stacked (L, ...) weights ----
    for l in range(L):
        # fused QKV projection: ONE wide (BS,H)@(H,3H) bf16 MXU matmul
        qkv = jnp.dot(x.astype(jnp.bfloat16), wqkv_ref[l],
                      preferred_element_type=jnp.float32) + bqkv_ref[l]   # (BS, 3H)
        qh = _split_heads(qkv[:, 0 * H:1 * H])                            # (NH, BS, HD)
        kh = _split_heads(qkv[:, 1 * H:2 * H])
        vh = _split_heads(qkv[:, 2 * H:3 * H])

        # scores + softmax (f32 VPU/EUP math)
        s = jnp.einsum('nqd,nkd->nqk', qh, kh,
                       preferred_element_type=jnp.float32) * scale + add_mask[None]
        s = s - jnp.max(s, axis=-1, keepdims=True)
        p = jnp.exp(s)
        p = p * pl.reciprocal(jnp.sum(p, axis=-1, keepdims=True), approx=True)
        ctx = jnp.einsum('nqk,nkd->nqd', p, vh,
                         preferred_element_type=jnp.float32)              # (NH, BS, HD)

        # output projection: single lane-dense (BS,H)@(H,H) dot, Wo un-split
        attn = jnp.dot(_merge_heads(ctx).astype(jnp.bfloat16), wo_ref[l],
                       preferred_element_type=jnp.float32) + bo_ref[l]
        x1 = _ln(x + attn, l1g_ref[l], l1b_ref[l])

        # FFN
        hmid = _gelu(jnp.dot(x1.astype(jnp.bfloat16), w1_ref[l],
                             preferred_element_type=jnp.float32) + b1_ref[l])
        ffn = jnp.dot(hmid.astype(jnp.bfloat16), w2_ref[l],
                      preferred_element_type=jnp.float32) + b2_ref[l]
        x = _ln(x1 + ffn, l2g_ref[l], l2b_ref[l])

    # ---- pooler = tanh(Linear(hidden[:, 0])) ----
    # CLS rows picked with a tiny (B,BS)@(BS,H) selection matmul (no slice+concat).
    cls = jnp.dot(sel_ref[...], x, preferred_element_type=jnp.float32)    # (B, H)
    pooled = jnp.tanh(jnp.dot(cls.astype(jnp.bfloat16), pw_ref[...],
                              preferred_element_type=jnp.float32) + pb_ref[...])
    out_ref[...] = pooled.astype(out_ref.dtype)


# ---------------- pallas_call wrapper ----------------
_PACK_KEYS = ["wqkv", "bqkv", "wo", "bo", "ln1_g", "ln1_b",
              "w1", "b1", "w2", "b2", "ln2_g", "ln2_b"]


def bert_pooled_forward(emb_flat, add_mask, cls_sel, emb_ln_g, emb_ln_b,
                        packed, pool_w, pool_b):
    inputs = ([emb_flat, add_mask, cls_sel, emb_ln_g, emb_ln_b]
              + [packed[k] for k in _PACK_KEYS] + [pool_w, pool_b])
    vmem_spec = pl.BlockSpec(memory_space=pltpu.MemorySpace.VMEM)
    # Grid-less single invocation: everything (activations + all stacked weights)
    # fits comfortably in VMEM, so there is no pipelining / per-step overhead.
    return pl.pallas_call(
        fused_bert_kernel,
        out_shape=jax.ShapeDtypeStruct((B, H), jnp.float32),
        in_specs=[vmem_spec] * len(inputs),
        out_specs=vmem_spec,
    )(*inputs)


# ---------------- parameter init (deterministic, synthetic) ----------------
def init_params(key):
    keys = jax.random.split(key, 64)
    it = iter(keys)
    std = 0.02

    def nrm(shape):
        return jax.random.normal(next(it), shape, jnp.float32) * std

    params = {
        "word_emb": nrm((VOCAB, H)),
        "pos_emb": nrm((MAX_POS, H)),
        "type_emb": nrm((TYPE_VOCAB, H)),
        "emb_ln_g": jnp.ones((1, H), jnp.float32),
        "emb_ln_b": jnp.zeros((1, H), jnp.float32),
        "pool_w": nrm((H, H)),
        "pool_b": jnp.zeros((1, H), jnp.float32),
        "layers": [],
    }
    for _ in range(L):
        params["layers"].append({
            "wq": nrm((H, H)), "bq": jnp.zeros((1, H), jnp.float32),
            "wk": nrm((H, H)), "bk": jnp.zeros((1, H), jnp.float32),
            "wv": nrm((H, H)), "bv": jnp.zeros((1, H), jnp.float32),
            "wo": nrm((H, H)), "bo": jnp.zeros((1, H), jnp.float32),
            "ln1_g": jnp.ones((1, H), jnp.float32),
            "ln1_b": jnp.zeros((1, H), jnp.float32),
            "w1": nrm((H, I)), "b1": jnp.zeros((1, I), jnp.float32),
            "w2": nrm((I, H)), "b2": jnp.zeros((1, H), jnp.float32),
            "ln2_g": jnp.ones((1, H), jnp.float32),
            "ln2_b": jnp.zeros((1, H), jnp.float32),
        })
    return params


def pack_layer_params(layers):
    """Stack per-layer params along a leading L axis; fuse Wq|Wk|Wv; bf16 matmul weights."""
    def stack(key, dtype=jnp.float32):
        return jnp.stack([lp[key] for lp in layers], axis=0).astype(dtype)

    wqkv = jnp.stack(
        [jnp.concatenate([lp["wq"], lp["wk"], lp["wv"]], axis=1) for lp in layers],
        axis=0).astype(jnp.bfloat16)                                     # (L, H, 3H)
    bqkv = jnp.stack(
        [jnp.concatenate([lp["bq"], lp["bk"], lp["bv"]], axis=1) for lp in layers],
        axis=0)                                                          # (L, 1, 3H) f32

    return {
        "wqkv": wqkv, "bqkv": bqkv,
        "wo": stack("wo", jnp.bfloat16), "bo": stack("bo"),
        "ln1_g": stack("ln1_g"), "ln1_b": stack("ln1_b"),
        "w1": stack("w1", jnp.bfloat16), "b1": stack("b1"),
        "w2": stack("w2", jnp.bfloat16), "b2": stack("b2"),
        "ln2_g": stack("ln2_g"), "ln2_b": stack("ln2_b"),
    }


# ---------------- host-side loop-invariant constants ----------------
def build_additive_mask(attention_mask):
    # Block-diagonal over the folded batch (no cross-example attention) AND key
    # padding, as an HF-style additive -10000 mask. Built ONCE, outside the kernel.
    key_ok = attention_mask.reshape(BS).astype(jnp.float32) > 0.5        # (BS,)
    blk = jnp.arange(BS, dtype=jnp.int32) // S
    allowed = (blk[:, None] == blk[None, :]) & key_ok[None, :]
    return jnp.where(allowed, 0.0, NEG).astype(jnp.float32)              # (BS, BS)


def build_cls_selector():
    # (B, BS) one-hot matrix picking row b*S (the CLS token) of each example.
    rows = (jnp.arange(B, dtype=jnp.int32) * S)[:, None]
    return (jnp.arange(BS, dtype=jnp.int32)[None, :] == rows).astype(jnp.float32)


# ---------------- forward pass (TripletNetwork.forward equivalent) ----------------
def triplet_network_forward(params, input_ids, attention_mask):
    Bb, Ss = input_ids.shape
    # Embeddings (gathers are glue in plain JAX).
    we = params["word_emb"][input_ids]                        # (B, S, H)
    pe = params["pos_emb"][:Ss][None, :, :]                   # (1, S, H)
    te = params["type_emb"][0][None, None, :]                 # token_type_ids = 0
    emb_flat = (we + pe + te).reshape(Bb * Ss, H).astype(jnp.float32)

    add_mask = build_additive_mask(attention_mask)
    cls_sel = build_cls_selector()
    packed = pack_layer_params(params["layers"])

    pooled = bert_pooled_forward(emb_flat, add_mask, cls_sel,
                                 params["emb_ln_g"], params["emb_ln_b"],
                                 packed,
                                 params["pool_w"].astype(jnp.bfloat16),
                                 params["pool_b"])
    return pooled                                             # == pooler_output (B, H)


if __name__ == "__main__":
    key = jax.random.PRNGKey(0)
    pkey, ikey = jax.random.split(key)
    params = init_params(pkey)

    input_ids = jax.random.randint(ikey, (B, S), 0, VOCAB, dtype=jnp.int32)
    attention_mask = jnp.array(
        [[1] * S, [1] * (S - 2) + [0] * 2], dtype=jnp.float32)

    out = triplet_network_forward(params, input_ids, attention_mask)
    out = jax.block_until_ready(out)
    assert out.shape == (B, H) and out.dtype == jnp.float32
    assert bool(jnp.all(jnp.isfinite(out)))
    print("KERNEL_OK")
</pallas_src>

<mosaic_0001>
module attributes {stable_mosaic.version = 11 : i64} {
  func.func @fused_bert_kernel(%arg0: memref<16x32xf32, #tpu.memory_space<vmem>>, %arg1: memref<16x16xf32, #tpu.memory_space<vmem>>, %arg2: memref<2x16xf32, #tpu.memory_space<vmem>>, %arg3: memref<1x32xf32, #tpu.memory_space<vmem>>, %arg4: memref<1x32xf32, #tpu.memory_space<vmem>>, %arg5: memref<2x32x96xbf16, #tpu.memory_space<vmem>>, %arg6: memref<2x1x96xf32, #tpu.memory_space<vmem>>, %arg7: memref<2x32x32xbf16, #tpu.memory_space<vmem>>, %arg8: memref<2x1x32xf32, #tpu.memory_space<vmem>>, %arg9: memref<2x1x32xf32, #tpu.memory_space<vmem>>, %arg10: memref<2x1x32xf32, #tpu.memory_space<vmem>>, %arg11: memref<2x32x64xbf16, #tpu.memory_space<vmem>>, %arg12: memref<2x1x64xf32, #tpu.memory_space<vmem>>, %arg13: memref<2x64x32xbf16, #tpu.memory_space<vmem>>, %arg14: memref<2x1x32xf32, #tpu.memory_space<vmem>>, %arg15: memref<2x1x32xf32, #tpu.memory_space<vmem>>, %arg16: memref<2x1x32xf32, #tpu.memory_space<vmem>>, %arg17: memref<32x32xbf16, #tpu.memory_space<vmem>>, %arg18: memref<1x32xf32, #tpu.memory_space<vmem>>, %arg19: memref<2x32xf32, #tpu.memory_space<vmem>>) attributes {dimension_semantics = [], scalar_prefetch = 0 : i64, scratch_operands = 0 : i64, tpu.core_type = #tpu.core_type<tc>} {
    %c0 = arith.constant 0 : index
    %c0_0 = arith.constant 0 : index
    %0 = vector.load %arg0[%c0, %c0_0] : memref<16x32xf32, #tpu.memory_space<vmem>>, vector<16x32xf32>
    %c0_1 = arith.constant 0 : index
    %c0_2 = arith.constant 0 : index
    %1 = vector.load %arg3[%c0_1, %c0_2] : memref<1x32xf32, #tpu.memory_space<vmem>>, vector<1x32xf32>
    %c0_3 = arith.constant 0 : index
    %c0_4 = arith.constant 0 : index
    %2 = vector.load %arg4[%c0_3, %c0_4] : memref<1x32xf32, #tpu.memory_space<vmem>>, vector<1x32xf32>
    %cst = arith.constant dense<0.000000e+00> : vector<16xf32>
    %3 = vector.multi_reduction <add>, %0, %cst [1] : vector<16x32xf32> to vector<16xf32>
    %4 = vector.shape_cast %3 : vector<16xf32> to vector<16x1xf32>
    %cst_5 = arith.constant 3.200000e+01 : f32
    %5 = vector.broadcast %cst_5 : f32 to vector<16x1xf32>
    %6 = arith.divf %4, %5 : vector<16x1xf32>
    %7 = vector.broadcast %6 : vector<16x1xf32> to vector<16x32xf32>
    %8 = arith.subf %0, %7 : vector<16x32xf32>
    %9 = arith.mulf %8, %8 : vector<16x32xf32>
    %cst_6 = arith.constant dense<0.000000e+00> : vector<16xf32>
    %10 = vector.multi_reduction <add>, %9, %cst_6 [1] : vector<16x32xf32> to vector<16xf32>
    %11 = vector.shape_cast %10 : vector<16xf32> to vector<16x1xf32>
    %cst_7 = arith.constant 3.200000e+01 : f32
    %12 = vector.broadcast %cst_7 : f32 to vector<16x1xf32>
    %13 = arith.divf %11, %12 : vector<16x1xf32>
    %14 = vector.broadcast %6 : vector<16x1xf32> to vector<16x32xf32>
    %15 = arith.subf %0, %14 : vector<16x32xf32>
    %cst_8 = arith.constant 9.99999996E-13 : f32
    %16 = vector.broadcast %cst_8 : f32 to vector<16x1xf32>
    %17 = arith.addf %13, %16 : vector<16x1xf32>
    %18 = math.rsqrt %17 : vector<16x1xf32>
    %19 = vector.broadcast %18 : vector<16x1xf32> to vector<16x32xf32>
    %20 = arith.mulf %15, %19 : vector<16x32xf32>
    %21 = vector.broadcast %1 : vector<1x32xf32> to vector<16x32xf32>
    %22 = arith.mulf %20, %21 : vector<16x32xf32>
    %23 = vector.broadcast %2 : vector<1x32xf32> to vector<16x32xf32>
    %24 = arith.addf %22, %23 : vector<16x32xf32>
    %c0_9 = arith.constant 0 : index
    %c0_10 = arith.constant 0 : index
    %25 = vector.load %arg1[%c0_9, %c0_10] : memref<16x16xf32, #tpu.memory_space<vmem>>, vector<16x16xf32>
    %26 = arith.truncf %24 : vector<16x32xf32> to vector<16x32xbf16>
    %c0_11 = arith.constant 0 : index
    %c0_12 = arith.constant 0 : index
    %c0_13 = arith.constant 0 : index
    %27 = vector.load %arg5[%c0_11, %c0_12, %c0_13] : memref<2x32x96xbf16, #tpu.memory_space<vmem>>, vector<1x32x96xbf16>
    %28 = vector.shape_cast %27 : vector<1x32x96xbf16> to vector<32x96xbf16>
    %cst_14 = arith.constant dense<0.000000e+00> : vector<16x96xf32>
    %29 = tpu.matmul %26, %28, %cst_14 {dimension_numbers = #tpu.dot_dimension_numbers<[1], [0], [0], [1], [0, 0, 1, 1], [], []>} : vector<16x32xbf16>, vector<32x96xbf16>, vector<16x96xf32> -> vector<16x96xf32>
    %c0_15 = arith.constant 0 : index
    %c0_16 = arith.constant 0 : index
    %c0_17 = arith.constant 0 : index
    %30 = vector.load %arg6[%c0_15, %c0_16, %c0_17] : memref<2x1x96xf32, #tpu.memory_space<vmem>>, vector<1x1x96xf32>
    %31 = vector.shape_cast %30 : vector<1x1x96xf32> to vector<1x96xf32>
    %32 = vector.broadcast %31 : vector<1x96xf32> to vector<16x96xf32>
    %33 = arith.addf %29, %32 : vector<16x96xf32>
    %34 = vector.extract_strided_slice %33 {offsets = [0, 0], sizes = [16, 32], strides = [1, 1]} : vector<16x96xf32> to vector<16x32xf32>
    %35 = vector.extract_strided_slice %34 {offsets = [0, 0], sizes = [16, 8], strides = [1, 1]} : vector<16x32xf32> to vector<16x8xf32>
    %36 = vector.extract_strided_slice %34 {offsets = [0, 8], sizes = [16, 8], strides = [1, 1]} : vector<16x32xf32> to vector<16x8xf32>
    %37 = vector.extract_strided_slice %34 {offsets = [0, 16], sizes = [16, 8], strides = [1, 1]} : vector<16x32xf32> to vector<16x8xf32>
    %38 = vector.extract_strided_slice %34 {offsets = [0, 24], sizes = [16, 8], strides = [1, 1]} : vector<16x32xf32> to vector<16x8xf32>
    %39 = vector.shape_cast %35 : vector<16x8xf32> to vector<1x16x8xf32>
    %40 = vector.shape_cast %36 : vector<16x8xf32> to vector<1x16x8xf32>
    %41 = vector.shape_cast %37 : vector<16x8xf32> to vector<1x16x8xf32>
    %42 = vector.shape_cast %38 : vector<16x8xf32> to vector<1x16x8xf32>
    %43 = tpu.concatenate %39, %40, %41, %42 in 0 : vector<1x16x8xf32>, vector<1x16x8xf32>, vector<1x16x8xf32>, vector<1x16x8xf32> -> vector<4x16x8xf32>
    %44 = vector.extract_strided_slice %33 {offsets = [0, 32], sizes = [16, 32], strides = [1, 1]} : vector<16x96xf32> to vector<16x32xf32>
    %45 = vector.extract_strided_slice %44 {offsets = [0, 0], sizes = [16, 8], strides = [1, 1]} : vector<16x32xf32> to vector<16x8xf32>
    %46 = vector.extract_strided_slice %44 {offsets = [0, 8], sizes = [16, 8], strides = [1, 1]} : vector<16x32xf32> to vector<16x8xf32>
    %47 = vector.extract_strided_slice %44 {offsets = [0, 16], sizes = [16, 8], strides = [1, 1]} : vector<16x32xf32> to vector<16x8xf32>
    %48 = vector.extract_strided_slice %44 {offsets = [0, 24], sizes = [16, 8], strides = [1, 1]} : vector<16x32xf32> to vector<16x8xf32>
    %49 = vector.shape_cast %45 : vector<16x8xf32> to vector<1x16x8xf32>
    %50 = vector.shape_cast %46 : vector<16x8xf32> to vector<1x16x8xf32>
    %51 = vector.shape_cast %47 : vector<16x8xf32> to vector<1x16x8xf32>
    %52 = vector.shape_cast %48 : vector<16x8xf32> to vector<1x16x8xf32>
    %53 = tpu.concatenate %49, %50, %51, %52 in 0 : vector<1x16x8xf32>, vector<1x16x8xf32>, vector<1x16x8xf32>, vector<1x16x8xf32> -> vector<4x16x8xf32>
    %54 = vector.extract_strided_slice %33 {offsets = [0, 64], sizes = [16, 32], strides = [1, 1]} : vector<16x96xf32> to vector<16x32xf32>
    %55 = vector.extract_strided_slice %54 {offsets = [0, 0], sizes = [16, 8], strides = [1, 1]} : vector<16x32xf32> to vector<16x8xf32>
    %56 = vector.extract_strided_slice %54 {offsets = [0, 8], sizes = [16, 8], strides = [1, 1]} : vector<16x32xf32> to vector<16x8xf32>
    %57 = vector.extract_strided_slice %54 {offsets = [0, 16], sizes = [16, 8], strides = [1, 1]} : vector<16x32xf32> to vector<16x8xf32>
    %58 = vector.extract_strided_slice %54 {offsets = [0, 24], sizes = [16, 8], strides = [1, 1]} : vector<16x32xf32> to vector<16x8xf32>
    %59 = vector.shape_cast %55 : vector<16x8xf32> to vector<1x16x8xf32>
    %60 = vector.shape_cast %56 : vector<16x8xf32> to vector<1x16x8xf32>
    %61 = vector.shape_cast %57 : vector<16x8xf32> to vector<1x16x8xf32>
    %62 = vector.shape_cast %58 : vector<16x8xf32> to vector<1x16x8xf32>
    %63 = tpu.concatenate %59, %60, %61, %62 in 0 : vector<1x16x8xf32>, vector<1x16x8xf32>, vector<1x16x8xf32>, vector<1x16x8xf32> -> vector<4x16x8xf32>
    "tpu.trace_start"() <{level = 10 : i32, message = "nqd,nkd->nqk"}> : () -> ()
    %cst_18 = arith.constant dense<0.000000e+00> : vector<4x16x16xf32>
    %64 = tpu.matmul %43, %53, %cst_18 {dimension_numbers = #tpu.dot_dimension_numbers<[2], [2], [1], [1], [0, 0, 0, 1, 1, 1], [0], [0]>} : vector<4x16x8xf32>, vector<4x16x8xf32>, vector<4x16x16xf32> -> vector<4x16x16xf32>
    "tpu.trace_stop"() : () -> ()
    %cst_19 = arith.constant 0.353553385 : f32
    %65 = vector.broadcast %cst_19 : f32 to vector<4x16x16xf32>
    %66 = arith.mulf %64, %65 : vector<4x16x16xf32>
    %67 = vector.shape_cast %25 : vector<16x16xf32> to vector<1x16x16xf32>
    %68 = vector.broadcast %67 : vector<1x16x16xf32> to vector<4x16x16xf32>
    %69 = arith.addf %66, %68 : vector<4x16x16xf32>
    %cst_20 = arith.constant dense<0xFF800000> : vector<4x16xf32>
    %70 = vector.multi_reduction <maximumf>, %69, %cst_20 [2] : vector<4x16x16xf32> to vector<4x16xf32>
    %71 = vector.shape_cast %70 : vector<4x16xf32> to vector<4x16x1xf32>
    %72 = vector.broadcast %71 : vector<4x16x1xf32> to vector<4x16x16xf32>
    %73 = arith.subf %69, %72 : vector<4x16x16xf32>
    %74 = math.exp %73 : vector<4x16x16xf32>
    %cst_21 = arith.constant dense<0.000000e+00> : vector<4x16xf32>
    %75 = vector.multi_reduction <add>, %74, %cst_21 [2] : vector<4x16x16xf32> to vector<4x16xf32>
    %76 = vector.shape_cast %75 : vector<4x16xf32> to vector<4x16x1xf32>
    %77 = tpu.reciprocal %76 {approx = true} : vector<4x16x1xf32> -> vector<4x16x1xf32>
    %78 = vector.broadcast %77 : vector<4x16x1xf32> to vector<4x16x16xf32>
    %79 = arith.mulf %74, %78 : vector<4x16x16xf32>
    "tpu.trace_start"() <{level = 10 : i32, message = "nqk,nkd->nqd"}> : () -> ()
    %cst_22 = arith.constant dense<0.000000e+00> : vector<4x16x8xf32>
    %80 = tpu.matmul %79, %63, %cst_22 {dimension_numbers = #tpu.dot_dimension_numbers<[2], [1], [1], [2], [0, 0, 0, 1, 1, 2], [0], [0]>} : vector<4x16x16xf32>, vector<4x16x8xf32>, vector<4x16x8xf32> -> vector<4x16x8xf32>
    "tpu.trace_stop"() : () -> ()
    %81 = vector.extract_strided_slice %80 {offsets = [0, 0, 0], sizes = [1, 16, 8], strides = [1, 1, 1]} : vector<4x16x8xf32> to vector<1x16x8xf32>
    %82 = vector.shape_cast %81 : vector<1x16x8xf32> to vector<16x8xf32>
    %83 = vector.extract_strided_slice %80 {offsets = [1, 0, 0], sizes = [1, 16, 8], strides = [1, 1, 1]} : vector<4x16x8xf32> to vector<1x16x8xf32>
    %84 = vector.shape_cast %83 : vector<1x16x8xf32> to vector<16x8xf32>
    %85 = vector.extract_strided_slice %80 {offsets = [2, 0, 0], sizes = [1, 16, 8], strides = [1, 1, 1]} : vector<4x16x8xf32> to vector<1x16x8xf32>
    %86 = vector.shape_cast %85 : vector<1x16x8xf32> to vector<16x8xf32>
    %87 = vector.extract_strided_slice %80 {offsets = [3, 0, 0], sizes = [1, 16, 8], strides = [1, 1, 1]} : vector<4x16x8xf32> to vector<1x16x8xf32>
    %88 = vector.shape_cast %87 : vector<1x16x8xf32> to vector<16x8xf32>
    %89 = tpu.concatenate %82, %84, %86, %88 in 1 : vector<16x8xf32>, vector<16x8xf32>, vector<16x8xf32>, vector<16x8xf32> -> vector<16x32xf32>
    %90 = arith.truncf %89 : vector<16x32xf32> to vector<16x32xbf16>
    %c0_23 = arith.constant 0 : index
    %c0_24 = arith.constant 0 : index
    %c0_25 = arith.constant 0 : index
    %91 = vector.load %arg7[%c0_23, %c0_24, %c0_25] : memref<2x32x32xbf16, #tpu.memory_space<vmem>>, vector<1x32x32xbf16>
    %92 = vector.shape_cast %91 : vector<1x32x32xbf16> to vector<32x32xbf16>
    %cst_26 = arith.constant dense<0.000000e+00> : vector<16x32xf32>
    %93 = tpu.matmul %90, %92, %cst_26 {dimension_numbers = #tpu.dot_dimension_numbers<[1], [0], [0], [1], [0, 0, 1, 1], [], []>} : vector<16x32xbf16>, vector<32x32xbf16>, vector<16x32xf32> -> vector<16x32xf32>
    %c0_27 = arith.constant 0 : index
    %c0_28 = arith.constant 0 : index
    %c0_29 = arith.constant 0 : index
    %94 = vector.load %arg8[%c0_27, %c0_28, %c0_29] : memref<2x1x32xf32, #tpu.memory_space<vmem>>, vector<1x1x32xf32>
    %95 = vector.shape_cast %94 : vector<1x1x32xf32> to vector<1x32xf32>
    %96 = vector.broadcast %95 : vector<1x32xf32> to vector<16x32xf32>
    %97 = arith.addf %93, %96 : vector<16x32xf32>
    %98 = arith.addf %24, %97 : vector<16x32xf32>
    %c0_30 = arith.constant 0 : index
    %c0_31 = arith.constant 0 : index
    %c0_32 = arith.constant 0 : index
    %99 = vector.load %arg9[%c0_30, %c0_31, %c0_32] : memref<2x1x32xf32, #tpu.memory_space<vmem>>, vector<1x1x32xf32>
    %100 = vector.shape_cast %99 : vector<1x1x32xf32> to vector<1x32xf32>
    %c0_33 = arith.constant 0 : index
    %c0_34 = arith.constant 0 : index
    %c0_35 = arith.constant 0 : index
    %101 = vector.load %arg10[%c0_33, %c0_34, %c0_35] : memref<2x1x32xf32, #tpu.memory_space<vmem>>, vector<1x1x32xf32>
    %102 = vector.shape_cast %101 : vector<1x1x32xf32> to vector<1x32xf32>
    %cst_36 = arith.constant dense<0.000000e+00> : vector<16xf32>
    %103 = vector.multi_reduction <add>, %98, %cst_36 [1] : vector<16x32xf32> to vector<16xf32>
    %104 = vector.shape_cast %103 : vector<16xf32> to vector<16x1xf32>
    %cst_37 = arith.constant 3.200000e+01 : f32
    %105 = vector.broadcast %cst_37 : f32 to vector<16x1xf32>
    %106 = arith.divf %104, %105 : vector<16x1xf32>
    %107 = vector.broadcast %106 : vector<16x1xf32> to vector<16x32xf32>
    %108 = arith.subf %98, %107 : vector<16x32xf32>
    %109 = arith.mulf %108, %108 : vector<16x32xf32>
    %cst_38 = arith.constant dense<0.000000e+00> : vector<16xf32>
    %110 = vector.multi_reduction <add>, %109, %cst_38 [1] : vector<16x32xf32> to vector<16xf32>
    %111 = vector.shape_cast %110 : vector<16xf32> to vector<16x1xf32>
    %cst_39 = arith.constant 3.200000e+01 : f32
    %112 = vector.broadcast %cst_39 : f32 to vector<16x1xf32>
    %113 = arith.divf %111, %112 : vector<16x1xf32>
    %114 = vector.broadcast %106 : vector<16x1xf32> to vector<16x32xf32>
    %115 = arith.subf %98, %114 : vector<16x32xf32>
    %cst_40 = arith.constant 9.99999996E-13 : f32
    %116 = vector.broadcast %cst_40 : f32 to vector<16x1xf32>
    %117 = arith.addf %113, %116 : vector<16x1xf32>
    %118 = math.rsqrt %117 : vector<16x1xf32>
    %119 = vector.broadcast %118 : vector<16x1xf32> to vector<16x32xf32>
    %120 = arith.mulf %115, %119 : vector<16x32xf32>
    %121 = vector.broadcast %100 : vector<1x32xf32> to vector<16x32xf32>
    %122 = arith.mulf %120, %121 : vector<16x32xf32>
    %123 = vector.broadcast %102 : vector<1x32xf32> to vector<16x32xf32>
    %124 = arith.addf %122, %123 : vector<16x32xf32>
    %125 = arith.truncf %124 : vector<16x32xf32> to vector<16x32xbf16>
    %c0_41 = arith.constant 0 : index
    %c0_42 = arith.constant 0 : index
    %c0_43 = arith.constant 0 : index
    %126 = vector.load %arg11[%c0_41, %c0_42, %c0_43] : memref<2x32x64xbf16, #tpu.memory_space<vmem>>, vector<1x32x64xbf16>
    %127 = vector.shape_cast %126 : vector<1x32x64xbf16> to vector<32x64xbf16>
    %cst_44 = arith.constant dense<0.000000e+00> : vector<16x64xf32>
    %128 = tpu.matmul %125, %127, %cst_44 {dimension_numbers = #tpu.dot_dimension_numbers<[1], [0], [0], [1], [0, 0, 1, 1], [], []>} : vector<16x32xbf16>, vector<32x64xbf16>, vector<16x64xf32> -> vector<16x64xf32>
    %c0_45 = arith.constant 0 : index
    %c0_46 = arith.constant 0 : index
    %c0_47 = arith.constant 0 : index
    %129 = vector.load %arg12[%c0_45, %c0_46, %c0_47] : memref<2x1x64xf32, #tpu.memory_space<vmem>>, vector<1x1x64xf32>
    %130 = vector.shape_cast %129 : vector<1x1x64xf32> to vector<1x64xf32>
    %131 = vector.broadcast %130 : vector<1x64xf32> to vector<16x64xf32>
    %132 = arith.addf %128, %131 : vector<16x64xf32>
    %cst_48 = arith.constant 5.000000e-01 : f32
    %133 = vector.broadcast %cst_48 : f32 to vector<16x64xf32>
    %134 = arith.mulf %133, %132 : vector<16x64xf32>
    %cst_49 = arith.constant 4.471500e-02 : f32
    %135 = vector.broadcast %cst_49 : f32 to vector<16x64xf32>
    %136 = arith.mulf %135, %132 : vector<16x64xf32>
    %137 = arith.mulf %136, %132 : vector<16x64xf32>
    %138 = arith.mulf %137, %132 : vector<16x64xf32>
    %139 = arith.addf %132, %138 : vector<16x64xf32>
    %cst_50 = arith.constant 0.797884583 : f32
    %140 = vector.broadcast %cst_50 : f32 to vector<16x64xf32>
    %141 = arith.mulf %140, %139 : vector<16x64xf32>
    %142 = math.tanh %141 : vector<16x64xf32>
    %cst_51 = arith.constant 1.000000e+00 : f32
    %143 = vector.broadcast %cst_51 : f32 to vector<16x64xf32>
    %144 = arith.addf %143, %142 : vector<16x64xf32>
    %145 = arith.mulf %134, %144 : vector<16x64xf32>
    %146 = arith.truncf %145 : vector<16x64xf32> to vector<16x64xbf16>
    %c0_52 = arith.constant 0 : index
    %c0_53 = arith.constant 0 : index
    %c0_54 = arith.constant 0 : index
    %147 = vector.load %arg13[%c0_52, %c0_53, %c0_54] : memref<2x64x32xbf16, #tpu.memory_space<vmem>>, vector<1x64x32xbf16>
    %148 = vector.shape_cast %147 : vector<1x64x32xbf16> to vector<64x32xbf16>
    %cst_55 = arith.constant dense<0.000000e+00> : vector<16x32xf32>
    %149 = tpu.matmul %146, %148, %cst_55 {dimension_numbers = #tpu.dot_dimension_numbers<[1], [0], [0], [1], [0, 0, 1, 1], [], []>} : vector<16x64xbf16>, vector<64x32xbf16>, vector<16x32xf32> -> vector<16x32xf32>
    %c0_56 = arith.constant 0 : index
    %c0_57 = arith.constant 0 : index
    %c0_58 = arith.constant 0 : index
    %150 = vector.load %arg14[%c0_56, %c0_57, %c0_58] : memref<2x1x32xf32, #tpu.memory_space<vmem>>, vector<1x1x32xf32>
    %151 = vector.shape_cast %150 : vector<1x1x32xf32> to vector<1x32xf32>
    %152 = vector.broadcast %151 : vector<1x32xf32> to vector<16x32xf32>
    %153 = arith.addf %149, %152 : vector<16x32xf32>
    %154 = arith.addf %124, %153 : vector<16x32xf32>
    %c0_59 = arith.constant 0 : index
    %c0_60 = arith.constant 0 : index
    %c0_61 = arith.constant 0 : index
    %155 = vector.load %arg15[%c0_59, %c0_60, %c0_61] : memref<2x1x32xf32, #tpu.memory_space<vmem>>, vector<1x1x32xf32>
    %156 = vector.shape_cast %155 : vector<1x1x32xf32> to vector<1x32xf32>
    %c0_62 = arith.constant 0 : index
    %c0_63 = arith.constant 0 : index
    %c0_64 = arith.constant 0 : index
    %157 = vector.load %arg16[%c0_62, %c0_63, %c0_64] : memref<2x1x32xf32, #tpu.memory_space<vmem>>, vector<1x1x32xf32>
    %158 = vector.shape_cast %157 : vector<1x1x32xf32> to vector<1x32xf32>
    %cst_65 = arith.constant dense<0.000000e+00> : vector<16xf32>
    %159 = vector.multi_reduction <add>, %154, %cst_65 [1] : vector<16x32xf32> to vector<16xf32>
    %160 = vector.shape_cast %159 : vector<16xf32> to vector<16x1xf32>
    %cst_66 = arith.constant 3.200000e+01 : f32
    %161 = vector.broadcast %cst_66 : f32 to vector<16x1xf32>
    %162 = arith.divf %160, %161 : vector<16x1xf32>
    %163 = vector.broadcast %162 : vector<16x1xf32> to vector<16x32xf32>
    %164 = arith.subf %154, %163 : vector<16x32xf32>
    %165 = arith.mulf %164, %164 : vector<16x32xf32>
    %cst_67 = arith.constant dense<0.000000e+00> : vector<16xf32>
    %166 = vector.multi_reduction <add>, %165, %cst_67 [1] : vector<16x32xf32> to vector<16xf32>
    %167 = vector.shape_cast %166 : vector<16xf32> to vector<16x1xf32>
    %cst_68 = arith.constant 3.200000e+01 : f32
    %168 = vector.broadcast %cst_68 : f32 to vector<16x1xf32>
    %169 = arith.divf %167, %168 : vector<16x1xf32>
    %170 = vector.broadcast %162 : vector<16x1xf32> to vector<16x32xf32>
    %171 = arith.subf %154, %170 : vector<16x32xf32>
    %cst_69 = arith.constant 9.99999996E-13 : f32
    %172 = vector.broadcast %cst_69 : f32 to vector<16x1xf32>
    %173 = arith.addf %169, %172 : vector<16x1xf32>
    %174 = math.rsqrt %173 : vector<16x1xf32>
    %175 = vector.broadcast %174 : vector<16x1xf32> to vector<16x32xf32>
    %176 = arith.mulf %171, %175 : vector<16x32xf32>
    %177 = vector.broadcast %156 : vector<1x32xf32> to vector<16x32xf32>
    %178 = arith.mulf %176, %177 : vector<16x32xf32>
    %179 = vector.broadcast %158 : vector<1x32xf32> to vector<16x32xf32>
    %180 = arith.addf %178, %179 : vector<16x32xf32>
    %181 = arith.truncf %180 : vector<16x32xf32> to vector<16x32xbf16>
    %c1 = arith.constant 1 : index
    %c0_70 = arith.constant 0 : index
    %c0_71 = arith.constant 0 : index
    %182 = vector.load %arg5[%c1, %c0_70, %c0_71] : memref<2x32x96xbf16, #tpu.memory_space<vmem>>, vector<1x32x96xbf16>
    %183 = vector.shape_cast %182 : vector<1x32x96xbf16> to vector<32x96xbf16>
    %cst_72 = arith.constant dense<0.000000e+00> : vector<16x96xf32>
    %184 = tpu.matmul %181, %183, %cst_72 {dimension_numbers = #tpu.dot_dimension_numbers<[1], [0], [0], [1], [0, 0, 1, 1], [], []>} : vector<16x32xbf16>, vector<32x96xbf16>, vector<16x96xf32> -> vector<16x96xf32>
    %c1_73 = arith.constant 1 : index
    %c0_74 = arith.constant 0 : index
    %c0_75 = arith.constant 0 : index
    %185 = vector.load %arg6[%c1_73, %c0_74, %c0_75] : memref<2x1x96xf32, #tpu.memory_space<vmem>>, vector<1x1x96xf32>
    %186 = vector.shape_cast %185 : vector<1x1x96xf32> to vector<1x96xf32>
    %187 = vector.broadcast %186 : vector<1x96xf32> to vector<16x96xf32>
    %188 = arith.addf %184, %187 : vector<16x96xf32>
    %189 = vector.extract_strided_slice %188 {offsets = [0, 0], sizes = [16, 32], strides = [1, 1]} : vector<16x96xf32> to vector<16x32xf32>
    %190 = vector.extract_strided_slice %189 {offsets = [0, 0], sizes = [16, 8], strides = [1, 1]} : vector<16x32xf32> to vector<16x8xf32>
    %191 = vector.extract_strided_slice %189 {offsets = [0, 8], sizes = [16, 8], strides = [1, 1]} : vector<16x32xf32> to vector<16x8xf32>
    %192 = vector.extract_strided_slice %189 {offsets = [0, 16], sizes = [16, 8], strides = [1, 1]} : vector<16x32xf32> to vector<16x8xf32>
    %193 = vector.extract_strided_slice %189 {offsets = [0, 24], sizes = [16, 8], strides = [1, 1]} : vector<16x32xf32> to vector<16x8xf32>
    %194 = vector.shape_cast %190 : vector<16x8xf32> to vector<1x16x8xf32>
    %195 = vector.shape_cast %191 : vector<16x8xf32> to vector<1x16x8xf32>
    %196 = vector.shape_cast %192 : vector<16x8xf32> to vector<1x16x8xf32>
    %197 = vector.shape_cast %193 : vector<16x8xf32> to vector<1x16x8xf32>
    %198 = tpu.concatenate %194, %195, %196, %197 in 0 : vector<1x16x8xf32>, vector<1x16x8xf32>, vector<1x16x8xf32>, vector<1x16x8xf32> -> vector<4x16x8xf32>
    %199 = vector.extract_strided_slice %188 {offsets = [0, 32], sizes = [16, 32], strides = [1, 1]} : vector<16x96xf32> to vector<16x32xf32>
    %200 = vector.extract_strided_slice %199 {offsets = [0, 0], sizes = [16, 8], strides = [1, 1]} : vector<16x32xf32> to vector<16x8xf32>
    %201 = vector.extract_strided_slice %199 {offsets = [0, 8], sizes = [16, 8], strides = [1, 1]} : vector<16x32xf32> to vector<16x8xf32>
    %202 = vector.extract_strided_slice %199 {offsets = [0, 16], sizes = [16, 8], strides = [1, 1]} : vector<16x32xf32> to vector<16x8xf32>
    %203 = vector.extract_strided_slice %199 {offsets = [0, 24], sizes = [16, 8], strides = [1, 1]} : vector<16x32xf32> to vector<16x8xf32>
    %204 = vector.shape_cast %200 : vector<16x8xf32> to vector<1x16x8xf32>
    %205 = vector.shape_cast %201 : vector<16x8xf32> to vector<1x16x8xf32>
    %206 = vector.shape_cast %202 : vector<16x8xf32> to vector<1x16x8xf32>
    %207 = vector.shape_cast %203 : vector<16x8xf32> to vector<1x16x8xf32>
    %208 = tpu.concatenate %204, %205, %206, %207 in 0 : vector<1x16x8xf32>, vector<1x16x8xf32>, vector<1x16x8xf32>, vector<1x16x8xf32> -> vector<4x16x8xf32>
    %209 = vector.extract_strided_slice %188 {offsets = [0, 64], sizes = [16, 32], strides = [1, 1]} : vector<16x96xf32> to vector<16x32xf32>
    %210 = vector.extract_strided_slice %209 {offsets = [0, 0], sizes = [16, 8], strides = [1, 1]} : vector<16x32xf32> to vector<16x8xf32>
    %211 = vector.extract_strided_slice %209 {offsets = [0, 8], sizes = [16, 8], strides = [1, 1]} : vector<16x32xf32> to vector<16x8xf32>
    %212 = vector.extract_strided_slice %209 {offsets = [0, 16], sizes = [16, 8], strides = [1, 1]} : vector<16x32xf32> to vector<16x8xf32>
    %213 = vector.extract_strided_slice %209 {offsets = [0, 24], sizes = [16, 8], strides = [1, 1]} : vector<16x32xf32> to vector<16x8xf32>
    %214 = vector.shape_cast %210 : vector<16x8xf32> to vector<1x16x8xf32>
    %215 = vector.shape_cast %211 : vector<16x8xf32> to vector<1x16x8xf32>
    %216 = vector.shape_cast %212 : vector<16x8xf32> to vector<1x16x8xf32>
    %217 = vector.shape_cast %213 : vector<16x8xf32> to vector<1x16x8xf32>
    %218 = tpu.concatenate %214, %215, %216, %217 in 0 : vector<1x16x8xf32>, vector<1x16x8xf32>, vector<1x16x8xf32>, vector<1x16x8xf32> -> vector<4x16x8xf32>
    "tpu.trace_start"() <{level = 10 : i32, message = "nqd,nkd->nqk"}> : () -> ()
    %cst_76 = arith.constant dense<0.000000e+00> : vector<4x16x16xf32>
    %219 = tpu.matmul %198, %208, %cst_76 {dimension_numbers = #tpu.dot_dimension_numbers<[2], [2], [1], [1], [0, 0, 0, 1, 1, 1], [0], [0]>} : vector<4x16x8xf32>, vector<4x16x8xf32>, vector<4x16x16xf32> -> vector<4x16x16xf32>
    "tpu.trace_stop"() : () -> ()
    %cst_77 = arith.constant 0.353553385 : f32
    %220 = vector.broadcast %cst_77 : f32 to vector<4x16x16xf32>
    %221 = arith.mulf %219, %220 : vector<4x16x16xf32>
    %222 = vector.shape_cast %25 : vector<16x16xf32> to vector<1x16x16xf32>
    %223 = vector.broadcast %222 : vector<1x16x16xf32> to vector<4x16x16xf32>
    %224 = arith.addf %221, %223 : vector<4x16x16xf32>
    %cst_78 = arith.constant dense<0xFF800000> : vector<4x16xf32>
    %225 = vector.multi_reduction <maximumf>, %224, %cst_78 [2] : vector<4x16x16xf32> to vector<4x16xf32>
    %226 = vector.shape_cast %225 : vector<4x16xf32> to vector<4x16x1xf32>
    %227 = vector.broadcast %226 : vector<4x16x1xf32> to vector<4x16x16xf32>
    %228 = arith.subf %224, %227 : vector<4x16x16xf32>
    %229 = math.exp %228 : vector<4x16x16xf32>
    %cst_79 = arith.constant dense<0.000000e+00> : vector<4x16xf32>
    %230 = vector.multi_reduction <add>, %229, %cst_79 [2] : vector<4x16x16xf32> to vector<4x16xf32>
    %231 = vector.shape_cast %230 : vector<4x16xf32> to vector<4x16x1xf32>
    %232 = tpu.reciprocal %231 {approx = true} : vector<4x16x1xf32> -> vector<4x16x1xf32>
    %233 = vector.broadcast %232 : vector<4x16x1xf32> to vector<4x16x16xf32>
    %234 = arith.mulf %229, %233 : vector<4x16x16xf32>
    "tpu.trace_start"() <{level = 10 : i32, message = "nqk,nkd->nqd"}> : () -> ()
    %cst_80 = arith.constant dense<0.000000e+00> : vector<4x16x8xf32>
    %235 = tpu.matmul %234, %218, %cst_80 {dimension_numbers = #tpu.dot_dimension_numbers<[2], [1], [1], [2], [0, 0, 0, 1, 1, 2], [0], [0]>} : vector<4x16x16xf32>, vector<4x16x8xf32>, vector<4x16x8xf32> -> vector<4x16x8xf32>
    "tpu.trace_stop"() : () -> ()
    %236 = vector.extract_strided_slice %235 {offsets = [0, 0, 0], sizes = [1, 16, 8], strides = [1, 1, 1]} : vector<4x16x8xf32> to vector<1x16x8xf32>
    %237 = vector.shape_cast %236 : vector<1x16x8xf32> to vector<16x8xf32>
    %238 = vector.extract_strided_slice %235 {offsets = [1, 0, 0], sizes = [1, 16, 8], strides = [1, 1, 1]} : vector<4x16x8xf32> to vector<1x16x8xf32>
    %239 = vector.shape_cast %238 : vector<1x16x8xf32> to vector<16x8xf32>
    %240 = vector.extract_strided_slice %235 {offsets = [2, 0, 0], sizes = [1, 16, 8], strides = [1, 1, 1]} : vector<4x16x8xf32> to vector<1x16x8xf32>
    %241 = vector.shape_cast %240 : vector<1x16x8xf32> to vector<16x8xf32>
    %242 = vector.extract_strided_slice %235 {offsets = [3, 0, 0], sizes = [1, 16, 8], strides = [1, 1, 1]} : vector<4x16x8xf32> to vector<1x16x8xf32>
    %243 = vector.shape_cast %242 : vector<1x16x8xf32> to vector<16x8xf32>
    %244 = tpu.concatenate %237, %239, %241, %243 in 1 : vector<16x8xf32>, vector<16x8xf32>, vector<16x8xf32>, vector<16x8xf32> -> vector<16x32xf32>
    %245 = arith.truncf %244 : vector<16x32xf32> to vector<16x32xbf16>
    %c1_81 = arith.constant 1 : index
    %c0_82 = arith.constant 0 : index
    %c0_83 = arith.constant 0 : index
    %246 = vector.load %arg7[%c1_81, %c0_82, %c0_83] : memref<2x32x32xbf16, #tpu.memory_space<vmem>>, vector<1x32x32xbf16>
    %247 = vector.shape_cast %246 : vector<1x32x32xbf16> to vector<32x32xbf16>
    %cst_84 = arith.constant dense<0.000000e+00> : vector<16x32xf32>
    %248 = tpu.matmul %245, %247, %cst_84 {dimension_numbers = #tpu.dot_dimension_numbers<[1], [0], [0], [1], [0, 0, 1, 1], [], []>} : vector<16x32xbf16>, vector<32x32xbf16>, vector<16x32xf32> -> vector<16x32xf32>
    %c1_85 = arith.constant 1 : index
    %c0_86 = arith.constant 0 : index
    %c0_87 = arith.constant 0 : index
    %249 = vector.load %arg8[%c1_85, %c0_86, %c0_87] : memref<2x1x32xf32, #tpu.memory_space<vmem>>, vector<1x1x32xf32>
    %250 = vector.shape_cast %249 : vector<1x1x32xf32> to vector<1x32xf32>
    %251 = vector.broadcast %250 : vector<1x32xf32> to vector<16x32xf32>
    %252 = arith.addf %248, %251 : vector<16x32xf32>
    %253 = arith.addf %180, %252 : vector<16x32xf32>
    %c1_88 = arith.constant 1 : index
    %c0_89 = arith.constant 0 : index
    %c0_90 = arith.constant 0 : index
    %254 = vector.load %arg9[%c1_88, %c0_89, %c0_90] : memref<2x1x32xf32, #tpu.memory_space<vmem>>, vector<1x1x32xf32>
    %255 = vector.shape_cast %254 : vector<1x1x32xf32> to vector<1x32xf32>
    %c1_91 = arith.constant 1 : index
    %c0_92 = arith.constant 0 : index
    %c0_93 = arith.constant 0 : index
    %256 = vector.load %arg10[%c1_91, %c0_92, %c0_93] : memref<2x1x32xf32, #tpu.memory_space<vmem>>, vector<1x1x32xf32>
    %257 = vector.shape_cast %256 : vector<1x1x32xf32> to vector<1x32xf32>
    %cst_94 = arith.constant dense<0.000000e+00> : vector<16xf32>
    %258 = vector.multi_reduction <add>, %253, %cst_94 [1] : vector<16x32xf32> to vector<16xf32>
    %259 = vector.shape_cast %258 : vector<16xf32> to vector<16x1xf32>
    %cst_95 = arith.constant 3.200000e+01 : f32
    %260 = vector.broadcast %cst_95 : f32 to vector<16x1xf32>
    %261 = arith.divf %259, %260 : vector<16x1xf32>
    %262 = vector.broadcast %261 : vector<16x1xf32> to vector<16x32xf32>
    %263 = arith.subf %253, %262 : vector<16x32xf32>
    %264 = arith.mulf %263, %263 : vector<16x32xf32>
    %cst_96 = arith.constant dense<0.000000e+00> : vector<16xf32>
    %265 = vector.multi_reduction <add>, %264, %cst_96 [1] : vector<16x32xf32> to vector<16xf32>
    %266 = vector.shape_cast %265 : vector<16xf32> to vector<16x1xf32>
    %cst_97 = arith.constant 3.200000e+01 : f32
    %267 = vector.broadcast %cst_97 : f32 to vector<16x1xf32>
    %268 = arith.divf %266, %267 : vector<16x1xf32>
    %269 = vector.broadcast %261 : vector<16x1xf32> to vector<16x32xf32>
    %270 = arith.subf %253, %269 : vector<16x32xf32>
    %cst_98 = arith.constant 9.99999996E-13 : f32
    %271 = vector.broadcast %cst_98 : f32 to vector<16x1xf32>
    %272 = arith.addf %268, %271 : vector<16x1xf32>
    %273 = math.rsqrt %272 : vector<16x1xf32>
    %274 = vector.broadcast %273 : vector<16x1xf32> to vector<16x32xf32>
    %275 = arith.mulf %270, %274 : vector<16x32xf32>
    %276 = vector.broadcast %255 : vector<1x32xf32> to vector<16x32xf32>
    %277 = arith.mulf %275, %276 : vector<16x32xf32>
    %278 = vector.broadcast %257 : vector<1x32xf32> to vector<16x32xf32>
    %279 = arith.addf %277, %278 : vector<16x32xf32>
    %280 = arith.truncf %279 : vector<16x32xf32> to vector<16x32xbf16>
    %c1_99 = arith.constant 1 : index
    %c0_100 = arith.constant 0 : index
    %c0_101 = arith.constant 0 : index
    %281 = vector.load %arg11[%c1_99, %c0_100, %c0_101] : memref<2x32x64xbf16, #tpu.memory_space<vmem>>, vector<1x32x64xbf16>
    %282 = vector.shape_cast %281 : vector<1x32x64xbf16> to vector<32x64xbf16>
    %cst_102 = arith.constant dense<0.000000e+00> : vector<16x64xf32>
    %283 = tpu.matmul %280, %282, %cst_102 {dimension_numbers = #tpu.dot_dimension_numbers<[1], [0], [0], [1], [0, 0, 1, 1], [], []>} : vector<16x32xbf16>, vector<32x64xbf16>, vector<16x64xf32> -> vector<16x64xf32>
    %c1_103 = arith.constant 1 : index
    %c0_104 = arith.constant 0 : index
    %c0_105 = arith.constant 0 : index
    %284 = vector.load %arg12[%c1_103, %c0_104, %c0_105] : memref<2x1x64xf32, #tpu.memory_space<vmem>>, vector<1x1x64xf32>
    %285 = vector.shape_cast %284 : vector<1x1x64xf32> to vector<1x64xf32>
    %286 = vector.broadcast %285 : vector<1x64xf32> to vector<16x64xf32>
    %287 = arith.addf %283, %286 : vector<16x64xf32>
    %cst_106 = arith.constant 5.000000e-01 : f32
    %288 = vector.broadcast %cst_106 : f32 to vector<16x64xf32>
    %289 = arith.mulf %288, %287 : vector<16x64xf32>
    %cst_107 = arith.constant 4.471500e-02 : f32
    %290 = vector.broadcast %cst_107 : f32 to vector<16x64xf32>
    %291 = arith.mulf %290, %287 : vector<16x64xf32>
    %292 = arith.mulf %291, %287 : vector<16x64xf32>
    %293 = arith.mulf %292, %287 : vector<16x64xf32>
    %294 = arith.addf %287, %293 : vector<16x64xf32>
    %cst_108 = arith.constant 0.797884583 : f32
    %295 = vector.broadcast %cst_108 : f32 to vector<16x64xf32>
    %296 = arith.mulf %295, %294 : vector<16x64xf32>
    %297 = math.tanh %296 : vector<16x64xf32>
    %cst_109 = arith.constant 1.000000e+00 : f32
    %298 = vector.broadcast %cst_109 : f32 to vector<16x64xf32>
    %299 = arith.addf %298, %297 : vector<16x64xf32>
    %300 = arith.mulf %289, %299 : vector<16x64xf32>
    %301 = arith.truncf %300 : vector<16x64xf32> to vector<16x64xbf16>
    %c1_110 = arith.constant 1 : index
    %c0_111 = arith.constant 0 : index
    %c0_112 = arith.constant 0 : index
    %302 = vector.load %arg13[%c1_110, %c0_111, %c0_112] : memref<2x64x32xbf16, #tpu.memory_space<vmem>>, vector<1x64x32xbf16>
    %303 = vector.shape_cast %302 : vector<1x64x32xbf16> to vector<64x32xbf16>
    %cst_113 = arith.constant dense<0.000000e+00> : vector<16x32xf32>
    %304 = tpu.matmul %301, %303, %cst_113 {dimension_numbers = #tpu.dot_dimension_numbers<[1], [0], [0], [1], [0, 0, 1, 1], [], []>} : vector<16x64xbf16>, vector<64x32xbf16>, vector<16x32xf32> -> vector<16x32xf32>
    %c1_114 = arith.constant 1 : index
    %c0_115 = arith.constant 0 : index
    %c0_116 = arith.constant 0 : index
    %305 = vector.load %arg14[%c1_114, %c0_115, %c0_116] : memref<2x1x32xf32, #tpu.memory_space<vmem>>, vector<1x1x32xf32>
    %306 = vector.shape_cast %305 : vector<1x1x32xf32> to vector<1x32xf32>
    %307 = vector.broadcast %306 : vector<1x32xf32> to vector<16x32xf32>
    %308 = arith.addf %304, %307 : vector<16x32xf32>
    %309 = arith.addf %279, %308 : vector<16x32xf32>
    %c1_117 = arith.constant 1 : index
    %c0_118 = arith.constant 0 : index
    %c0_119 = arith.constant 0 : index
    %310 = vector.load %arg15[%c1_117, %c0_118, %c0_119] : memref<2x1x32xf32, #tpu.memory_space<vmem>>, vector<1x1x32xf32>
    %311 = vector.shape_cast %310 : vector<1x1x32xf32> to vector<1x32xf32>
    %c1_120 = arith.constant 1 : index
    %c0_121 = arith.constant 0 : index
    %c0_122 = arith.constant 0 : index
    %312 = vector.load %arg16[%c1_120, %c0_121, %c0_122] : memref<2x1x32xf32, #tpu.memory_space<vmem>>, vector<1x1x32xf32>
    %313 = vector.shape_cast %312 : vector<1x1x32xf32> to vector<1x32xf32>
    %cst_123 = arith.constant dense<0.000000e+00> : vector<16xf32>
    %314 = vector.multi_reduction <add>, %309, %cst_123 [1] : vector<16x32xf32> to vector<16xf32>
    %315 = vector.shape_cast %314 : vector<16xf32> to vector<16x1xf32>
    %cst_124 = arith.constant 3.200000e+01 : f32
    %316 = vector.broadcast %cst_124 : f32 to vector<16x1xf32>
    %317 = arith.divf %315, %316 : vector<16x1xf32>
    %318 = vector.broadcast %317 : vector<16x1xf32> to vector<16x32xf32>
    %319 = arith.subf %309, %318 : vector<16x32xf32>
    %320 = arith.mulf %319, %319 : vector<16x32xf32>
    %cst_125 = arith.constant dense<0.000000e+00> : vector<16xf32>
    %321 = vector.multi_reduction <add>, %320, %cst_125 [1] : vector<16x32xf32> to vector<16xf32>
    %322 = vector.shape_cast %321 : vector<16xf32> to vector<16x1xf32>
    %cst_126 = arith.constant 3.200000e+01 : f32
    %323 = vector.broadcast %cst_126 : f32 to vector<16x1xf32>
    %324 = arith.divf %322, %323 : vector<16x1xf32>
    %325 = vector.broadcast %317 : vector<16x1xf32> to vector<16x32xf32>
    %326 = arith.subf %309, %325 : vector<16x32xf32>
    %cst_127 = arith.constant 9.99999996E-13 : f32
    %327 = vector.broadcast %cst_127 : f32 to vector<16x1xf32>
    %328 = arith.addf %324, %327 : vector<16x1xf32>
    %329 = math.rsqrt %328 : vector<16x1xf32>
    %330 = vector.broadcast %329 : vector<16x1xf32> to vector<16x32xf32>
    %331 = arith.mulf %326, %330 : vector<16x32xf32>
    %332 = vector.broadcast %311 : vector<1x32xf32> to vector<16x32xf32>
    %333 = arith.mulf %331, %332 : vector<16x32xf32>
    %334 = vector.broadcast %313 : vector<1x32xf32> to vector<16x32xf32>
    %335 = arith.addf %333, %334 : vector<16x32xf32>
    %c0_128 = arith.constant 0 : index
    %c0_129 = arith.constant 0 : index
    %336 = vector.load %arg2[%c0_128, %c0_129] : memref<2x16xf32, #tpu.memory_space<vmem>>, vector<2x16xf32>
    %cst_130 = arith.constant dense<0.000000e+00> : vector<2x32xf32>
    %337 = tpu.matmul %336, %335, %cst_130 {dimension_numbers = #tpu.dot_dimension_numbers<[1], [0], [0], [1], [0, 0, 1, 1], [], []>} : vector<2x16xf32>, vector<16x32xf32>, vector<2x32xf32> -> vector<2x32xf32>
    %338 = arith.truncf %337 : vector<2x32xf32> to vector<2x32xbf16>
    %c0_131 = arith.constant 0 : index
    %c0_132 = arith.constant 0 : index
    %339 = vector.load %arg17[%c0_131, %c0_132] : memref<32x32xbf16, #tpu.memory_space<vmem>>, vector<32x32xbf16>
    %cst_133 = arith.constant dense<0.000000e+00> : vector<2x32xf32>
    %340 = tpu.matmul %338, %339, %cst_133 {dimension_numbers = #tpu.dot_dimension_numbers<[1], [0], [0], [1], [0, 0, 1, 1], [], []>} : vector<2x32xbf16>, vector<32x32xbf16>, vector<2x32xf32> -> vector<2x32xf32>
    %c0_134 = arith.constant 0 : index
    %c0_135 = arith.constant 0 : index
    %341 = vector.load %arg18[%c0_134, %c0_135] : memref<1x32xf32, #tpu.memory_space<vmem>>, vector<1x32xf32>
    %342 = vector.broadcast %341 : vector<1x32xf32> to vector<2x32xf32>
    %343 = arith.addf %340, %342 : vector<2x32xf32>
    %344 = math.tanh %343 : vector<2x32xf32>
    %c0_136 = arith.constant 0 : index
    %c0_137 = arith.constant 0 : index
    %345 = vector.load %arg19[%c0_136, %c0_137] : memref<2x32xf32, #tpu.memory_space<vmem>>, vector<2x32xf32>
    tpu.vector_store %arg19[%c0_136, %c0_137], %344 {strides = array<i32>} : memref<2x32xf32, #tpu.memory_space<vmem>>, vector<2x32xf32>,
    return
  }
}

</mosaic_0001>

<bundles_post_ra>
// kernel: tpu_custom_call.1
= control target key start
LH: loop header
LB: loop body
LE: loop exit
PB: predicated region body
PF: predicated region fallthrough
CT: control target
= control target key end

     0   :  { %s4578_s0 = inlined_call_operand.hbm [shape: f32[16,32], index: 0, kind: input, shape index: {}]   ;;  %s4579_s1 = inlined_call_operand.hbm [shape: f32[16,16], index: 1, kind: input, shape index: {}]   ;;  %s4580_s2 = inlined_call_operand.hbm [shape: f32[2,16], index: 2, kind: input, shape index: {}]   ;;  %s4581_s3 = inlined_call_operand.vmem [shape: f32[1,32], index: 3, kind: input, shape index: {}]   ;;  %s4582_s4 = inlined_call_operand.hbm [shape: f32[1,32], index: 4, kind: input, shape index: {}]   ;;  %s4583_s5 = inlined_call_operand.vmem [shape: bf16[2,32,96], index: 5, kind: input, shape index: {}]   ;;  %s4584_s6 = inlined_call_operand.hbm [shape: f32[2,1,96], index: 6, kind: input, shape index: {}]   ;;  %s4585_s7 = inlined_call_operand.vmem [shape: bf16[2,32,32], index: 7, kind: input, shape index: {}]   ;;  %s4586_s8 = inlined_call_operand.hbm [shape: f32[2,1,32], index: 8, kind: input, shape index: {}]   ;;  %s4587_s9 = inlined_call_operand.hbm [shape: f32[2,1,32], index: 9, kind: input, shape index: {}]   ;;  %s4588_s10 = inlined_call_operand.hbm [shape: f32[2,1,32], index: 10, kind: input, shape index: {}]   ;;  %s4589_s11 = inlined_call_operand.vmem [shape: bf16[2,32,64], index: 11, kind: input, shape index: {}]   ;;  %s4590_s12 = inlined_call_operand.hbm [shape: f32[2,1,64], index: 12, kind: input, shape index: {}]   ;;  %s4591_s13 = inlined_call_operand.vmem [shape: bf16[2,64,32], index: 13, kind: input, shape index: {}]   ;;  %s4592_s14 = inlined_call_operand.vmem [shape: f32[2,1,32], index: 14, kind: input, shape index: {}]   ;;  %s4593_s15 = inlined_call_operand.vmem [shape: f32[2,1,32], index: 15, kind: input, shape index: {}]   ;;  %s4594_s16 = inlined_call_operand.vmem [shape: f32[2,1,32], index: 16, kind: input, shape index: {}]   ;;  %s4595_s17 = inlined_call_operand.vmem [shape: bf16[32,32], index: 17, kind: input, shape index: {}]   ;;  %s4596_s18 = inlined_call_operand.vmem [shape: f32[1,32], index: 18, kind: input, shape index: {}]   ;;  %s4597_s19 = inlined_call_operand.hbm [shape: f32[2,32], index: 19, kind: output, shape index: {}]  }
   0x1   :  { %4604 = sst [smem:[#allocation24_spill]] %s4578_s0 }
   0x2   :  { %4605 = sst [smem:[#allocation25_spill]] %s4579_s1 }
   0x3   :  { %4606 = sst [smem:[#allocation26_spill]] %s4580_s2 }
   0x4   :  { %4607 = sst [smem:[#allocation27_spill]] %s4581_s3 }
   0x5   :  { %24 = vsyncpa [#allocation3], 0 }
   0x6   :  { %25 = vsyncpa [#allocation6], 0 }
   0x7   :  { %26 = vsyncpa [#allocation9], 0 }
   0x8   :  { %27 = vsyncpa [#allocation12], 0 }
   0x9   :  { %28 = vsyncpa [#allocation15], 0 }
   0xa   :  { %29 = vsyncpa [#allocation4], 0  ;;  %s3878_s0 = smov [#allocation5]   ;;  %s3879_s20 = smov [#allocation8]  }
   0xb   :  { %s47_s30 = sshll.u32 %s3878_s0, 4  ;;  %s72_s21 = sshll.u32 %s3879_s20, 4  ;;  %s48_s30 = int_to_ptr.vmem [resolvable:$true] %s47_s30  ;;  %s4001_s21 = int_to_ptr.vmem [resolvable:$true] %s72_s21 }
   0xc   :  { %s4608_s2 = sld [smem:[#allocation25_spill]] }
  0x12   :  { %s3646_s23 = scalar_lea.hbm %s4608_s2, 256 }
  0x13   :  { %p3647_p0 = scmp.ne.s32.totalorder %s4608_s2, %s3646_s23  ;;  %p3650_p1 = scmp.lt.u32.totalorder %s3646_s23, %s4608_s2 }
  0x15   :  { %p3652_p2 = pnand %p3650_p1, %p3647_p0 }
  0x17   :  { %3655 = shalt.err (!%p3652_p2)
}
  0x18   :  { %s3656_s27 = scalar_lea.vmem %s48_s30, 256  ;;  %p3661_p4 = scmp.lt.s32.totalorder %s48_s30, %s48_s30 }
  0x19   :  { %p3657_p3 = scmp.ne.s32.totalorder %s48_s30, %s3656_s27  ;;  %p3662_p5 = scmp.lt.s32.totalorder %s3656_s27, %s3656_s27 }
  0x1b   :  { %p3663_p6 = por %p3662_p5, %p3661_p4 }
  0x1d   :  { %p3664_p7 = pnand %p3663_p6, %p3657_p3 }
  0x1f   :  { %3667 = shalt.err (!%p3664_p7)
}
  0x20   :  { %s4601_s28 = smov 128   ;;  %s4602_s29 = smov 8  }
  0x21   :  { %53 = dma.hbm_to_vmem [thread:$0]  %s4608_s2, 256, %s48_s30, [#allocation6], %s4601_s28, %s4601_s28, %s4602_s29  }
  0x22   :  { %s3668_s23 = scalar_lea.hbm %s4582_s4, 16 }
  0x23   :  { %p3669_p8 = scmp.ne.s32.totalorder %s4582_s4, %s3668_s23  ;;  %p3672_p9 = scmp.lt.u32.totalorder %s3668_s23, %s4582_s4 }
  0x25   :  { %p3674_p10 = pnand %p3672_p9, %p3669_p8 }
  0x27   :  { %3677 = shalt.err (!%p3674_p10)
}
  0x28   :  { %s3678_s27 = scalar_lea.vmem %s4001_s21, 16  ;;  %s3682_s30 = scalar_lea.vmem %s4001_s21, 32 }
  0x29   :  { %p3679_p11 = scmp.ne.s32.totalorder %s4001_s21, %s3678_s27  ;;  %p3683_p12 = scmp.lt.s32.totalorder %s4001_s21, %s4001_s21 }
  0x2a   :  { %p3684_p13 = scmp.lt.s32.totalorder %s3682_s30, %s3678_s27 }
  0x2c   :  { %p3685_p0 = por %p3684_p13, %p3683_p12 }
  0x2e   :  { %p3686_p1 = pnand %p3685_p0, %p3679_p11 }
  0x30   :  { %3689 = shalt.err (!%p3686_p1)
}
  0x31   :  { %75 = dma.hbm_to_vmem [thread:$0]  %s4582_s4, 16, %s4001_s21, [#allocation9]  }
  0x32   :  { %s3882_s20 = smov [#allocation11]   ;;  %s3883_s22 = smov [#allocation14]  }
  0x33   :  { %s97_s1 = sshll.u32 %s3882_s20, 4  ;;  %s121_s23 = sshll.u32 %s3883_s22, 4  ;;  %s98_s1 = int_to_ptr.vmem [resolvable:$true] %s97_s1  ;;  %s4036_s23 = int_to_ptr.vmem [resolvable:$true] %s121_s23 }
  0x34   :  { %s3690_s3 = scalar_lea.hbm %s4586_s8, 32 }
  0x35   :  { %p3691_p2 = scmp.ne.s32.totalorder %s4586_s8, %s3690_s3  ;;  %p3694_p3 = scmp.lt.u32.totalorder %s3690_s3, %s4586_s8 }
  0x37   :  { %p3696_p4 = pnand %p3694_p3, %p3691_p2 }
  0x39   :  { %3699 = shalt.err (!%p3696_p4)
}
  0x3a   :  { %s3700_s4 = scalar_lea.vmem %s98_s1, 32  ;;  %p3705_p6 = scmp.lt.s32.totalorder %s98_s1, %s98_s1 }
  0x3b   :  { %p3701_p5 = scmp.ne.s32.totalorder %s98_s1, %s3700_s4  ;;  %p3706_p7 = scmp.lt.s32.totalorder %s3700_s4, %s3700_s4 }
  0x3d   :  { %p3707_p8 = por %p3706_p7, %p3705_p6 }
  0x3f   :  { %p3708_p9 = pnand %p3707_p8, %p3701_p5 }
  0x41   :  { %3711 = shalt.err (!%p3708_p9)
}
  0x42   :  { %s3884_s21 = smov 16   ;;  %s3885_s2 = smov 1  }
  0x43   :  { %103 = dma.hbm_to_vmem [thread:$0]  %s4586_s8, 32, %s98_s1, [#allocation12], %s3884_s21, %s3884_s21, %s3885_s2  }
  0x44   :  { %s3712_s24 = scalar_lea.hbm %s4588_s10, 32 }
  0x45   :  { %p3713_p10 = scmp.ne.s32.totalorder %s4588_s10, %s3712_s24  ;;  %p3716_p11 = scmp.lt.u32.totalorder %s3712_s24, %s4588_s10 }
  0x47   :  { %p3718_p12 = pnand %p3716_p11, %p3713_p10 }
  0x49   :  { %3721 = shalt.err (!%p3718_p12)
}
  0x4a   :  { %s3722_s30 = scalar_lea.vmem %s4036_s23, 32  ;;  %p3727_p0 = scmp.lt.s32.totalorder %s4036_s23, %s4036_s23 }
  0x4b   :  { %p3723_p13 = scmp.ne.s32.totalorder %s4036_s23, %s3722_s30  ;;  %p3728_p1 = scmp.lt.s32.totalorder %s3722_s30, %s3722_s30 }
  0x4d   :  { %p3729_p2 = por %p3728_p1, %p3727_p0 }
  0x4f   :  { %p3730_p3 = pnand %p3729_p2, %p3723_p13 }
  0x51   :  { %3733 = shalt.err (!%p3730_p3)
}
  0x52   :  { %127 = dma.hbm_to_vmem [thread:$0]  %s4588_s10, 32, %s4036_s23, [#allocation15], %s3884_s21, %s3884_s21, %s3885_s2  }
  0x53   :  { %s3886_s4 = smov [#allocation2]   ;;  %s3887_s20 = smov [#allocation7]  }
  0x54   :  { %s35_s0 = sshll.u32 %s3886_s4, 4  ;;  %s60_s28 = sshll.u32 %s3887_s20, 4  ;;  %s36_s0 = int_to_ptr.vmem [resolvable:$true] %s35_s0  ;;  %s61_s28 = int_to_ptr.vmem [resolvable:$true] %s60_s28 }
  0x55   :  { %s4609_s25 = sld [smem:[#allocation24_spill]] }
  0x5b   :  { %s3734_s3 = scalar_lea.hbm %s4609_s25, 256 }
  0x5c   :  { %p3735_p4 = scmp.ne.s32.totalorder %s4609_s25, %s3734_s3  ;;  %p3738_p5 = scmp.lt.u32.totalorder %s3734_s3, %s4609_s25 }
  0x5e   :  { %p3740_p6 = pnand %p3738_p5, %p3735_p4 }
  0x60   :  { %3743 = shalt.err (!%p3740_p6)
}
  0x61   :  { %s3744_s10 = scalar_lea.vmem %s36_s0, 256  ;;  %p3749_p8 = scmp.lt.s32.totalorder %s36_s0, %s36_s0 }
  0x62   :  { %p3745_p7 = scmp.ne.s32.totalorder %s36_s0, %s3744_s10  ;;  %p3750_p9 = scmp.lt.s32.totalorder %s3744_s10, %s3744_s10 }
  0x64   :  { %p3751_p10 = por %p3750_p9, %p3749_p8 }
  0x66   :  { %p3752_p11 = pnand %p3751_p10, %p3745_p7 }
  0x68   :  { %3755 = shalt.err (!%p3752_p11)
}
  0x69   :  { %s4610_s23 = smov 8   ;;  %s4611_s8 = smov 128  }
  0x6a   :  { %41 = dma.hbm_to_vmem [thread:$0]  %s4609_s25, 256, %s36_s0, [#allocation3], %s4611_s8, %s4611_s8, %s4610_s23  }
  0x6b   :  { %s4612_s29 = sld [smem:[#allocation26_spill]] }
  0x71   :  { %s3756_s24 = scalar_lea.hbm %s4612_s29, 32 }
  0x72   :  { %p3757_p12 = scmp.ne.s32.totalorder %s4612_s29, %s3756_s24  ;;  %p3760_p13 = scmp.lt.u32.totalorder %s3756_s24, %s4612_s29 }
  0x74   :  { %p3762_p0 = pnand %p3760_p13, %p3757_p12 }
  0x76   :  { %3765 = shalt.err (!%p3762_p0)
}
  0x77   :  { %s3766_s10 = scalar_lea.vmem %s61_s28, 32  ;;  %p3771_p2 = scmp.lt.s32.totalorder %s61_s28, %s61_s28 }
  0x78   :  { %p3767_p1 = scmp.ne.s32.totalorder %s61_s28, %s3766_s10  ;;  %p3772_p3 = scmp.lt.s32.totalorder %s3766_s10, %s3766_s10 }
  0x7a   :  { %p3773_p4 = por %p3772_p3, %p3771_p2 }
  0x7c   :  { %p3774_p5 = pnand %p3773_p4, %p3767_p1 }
  0x7e   :  { %3777 = shalt.err (!%p3774_p5)
}
  0x7f   :  { %63 = dma.hbm_to_vmem [thread:$0]  %s4612_s29, 32, %s61_s28, [#allocation6]  }
  0x80   :  { %s3888_s8 = smov [#allocation10]   ;;  %s3889_s4 = smov [#allocation13]  }
  0x81   :  { %s83_s1 = sshll.u32 %s3888_s8, 4  ;;  %s109_s20 = sshll.u32 %s3889_s4, 4  ;;  %s84_s1 = int_to_ptr.vmem [resolvable:$true] %s83_s1  ;;  %s4100_s20 = int_to_ptr.vmem [resolvable:$true] %s109_s20 }
  0x82   :  { %s3778_s3 = scalar_lea.hbm %s4584_s6, 32 }
  0x83   :  { %p3779_p6 = scmp.ne.s32.totalorder %s4584_s6, %s3778_s3  ;;  %p3782_p7 = scmp.lt.u32.totalorder %s3778_s3, %s4584_s6 }
  0x85   :  { %p3784_p8 = pnand %p3782_p7, %p3779_p6 }
  0x87   :  { %3787 = shalt.err (!%p3784_p8)
}
  0x88   :  { %s3788_s28 = scalar_lea.vmem %s84_s1, 32  ;;  %p3793_p10 = scmp.lt.s32.totalorder %s84_s1, %s84_s1 }
  0x89   :  { %p3789_p9 = scmp.ne.s32.totalorder %s84_s1, %s3788_s28  ;;  %p3794_p11 = scmp.lt.s32.totalorder %s3788_s28, %s3788_s28 }
  0x8b   :  { %p3795_p12 = por %p3794_p11, %p3793_p10 }
  0x8d   :  { %p3796_p13 = pnand %p3795_p12, %p3789_p9 }
  0x8f   :  { %3799 = shalt.err (!%p3796_p13)
}
  0x90   :  { %89 = dma.hbm_to_vmem [thread:$0]  %s4584_s6, 32, %s84_s1, [#allocation9], %s3884_s21, %s3884_s21, %s3885_s2  }
  0x91   :  { %s3800_s4 = scalar_lea.hbm %s4587_s9, 32 }
  0x92   :  { %p3801_p0 = scmp.ne.s32.totalorder %s4587_s9, %s3800_s4  ;;  %p3804_p1 = scmp.lt.u32.totalorder %s3800_s4, %s4587_s9 }
  0x94   :  { %p3806_p2 = pnand %p3804_p1, %p3801_p0 }
  0x96   :  { %3809 = shalt.err (!%p3806_p2)
}
  0x97   :  { %s3810_s27 = scalar_lea.vmem %s4100_s20, 32  ;;  %p3815_p4 = scmp.lt.s32.totalorder %s4100_s20, %s4100_s20 }
  0x98   :  { %p3811_p3 = scmp.ne.s32.totalorder %s4100_s20, %s3810_s27  ;;  %p3816_p5 = scmp.lt.s32.totalorder %s3810_s27, %s3810_s27 }
  0x9a   :  { %p3817_p6 = por %p3816_p5, %p3815_p4 }
  0x9c   :  { %p3818_p7 = pnand %p3817_p6, %p3811_p3 }
  0x9e   :  { %3821 = shalt.err (!%p3818_p7)
}
  0x9f   :  { %115 = dma.hbm_to_vmem [thread:$0]  %s4587_s9, 32, %s4100_s20, [#allocation12], %s3884_s21, %s3884_s21, %s3885_s2  }
  0xa0   :  { %s3890_s30 = smov [#allocation16]   ;;  %s3822_s0 = scalar_lea.hbm %s4590_s12, 32 }
  0xa1   :  { %s135_s10 = sshll.u32 %s3890_s30, 4  ;;  %p3823_p8 = scmp.ne.s32.totalorder %s4590_s12, %s3822_s0  ;;  %s136_s10 = int_to_ptr.vmem [resolvable:$true] %s135_s10 }
  0xa2   :  { %p3826_p9 = scmp.lt.u32.totalorder %s3822_s0, %s4590_s12 }
  0xa4   :  { %p3828_p10 = pnand %p3826_p9, %p3823_p8 }
  0xa6   :  { %3831 = shalt.err (!%p3828_p10)
}
  0xa7   :  { %s3832_s24 = scalar_lea.vmem %s136_s10, 32  ;;  %p3837_p12 = scmp.lt.s32.totalorder %s136_s10, %s136_s10 }
  0xa8   :  { %p3833_p11 = scmp.ne.s32.totalorder %s136_s10, %s3832_s24  ;;  %p3838_p13 = scmp.lt.s32.totalorder %s3832_s24, %s3832_s24 }
  0xaa   :  { %p3839_p0 = por %p3838_p13, %p3837_p12 }
  0xac   :  { %p3840_p1 = pnand %p3839_p0, %p3833_p11 }
  0xae   :  { %3843 = shalt.err (!%p3840_p1)
}
  0xaf   :  { %141 = dma.hbm_to_vmem [thread:$0]  %s4590_s12, 32, %s136_s10, [#allocation15], %s3884_s21, %s3884_s21, %s3885_s2  }
  0xb0   :  { %3866 = dma.done.wait [#allocation3], 256  }
  0xb1   :  { %3867 = vsyncadd [#allocation3], 4294967040 }
  0xb2   :  { %3868 = dma.done.wait [#allocation6], 288  }
  0xb3   :  { %3869 = vsyncadd [#allocation6], 4294967008 }
  0xb4   :  { %3870 = dma.done.wait [#allocation9], 48  }
  0xb5   :  { %3871 = vsyncadd [#allocation9], 4294967248 }
  0xb6   :  { %3872 = dma.done.wait [#allocation12], 64  }
  0xb7   :  { %3873 = vsyncadd [#allocation12], 4294967232 }
  0xb8   :  { %3874 = dma.done.wait [#allocation15], 64  }
  0xb9   :  { %3875 = vsyncadd [#allocation15], 4294967232  ;;  %vm186_vm0 = vcmask 261120   ;;  %v182_v0 = vld [vmem:[#allocation2] sm:$0xff]  ;;  %v183_v1 = vld [vmem:[#allocation2 + $0x8] sm:$0xff]  ;;  %v3891_v15 = vmov 0.0  }
  0xba   :  { %v187_v2 = vsel %vm186_vm0, %v182_v0, 0.0  ;;  %v190_v3 = vsel %vm186_vm0, %v183_v1, 0.0  ;;  %v3530_v14 = vld [vmem:[%s4583_s5] sm:$0xff]   ;;  %3115 = vmatprep.subr.bf16.mxu0 %v3891_v15  ;;  %v3531_v16 = vld [vmem:[%s4583_s5 + $0x8] sm:$0xff]   ;;  %vm3892_vm1 = vmmov 0   ;;  %s4613_s1 = sld [smem:[#allocation27_spill]] }
  0xbb   :  { %188 = vadd.xlane.f32.xlu0 %v187_v2  ;;  %3116 = vmatpush3.bf16.msra.mxu0 %v3530_v14  ;;  %v2896_v29 = vld [vmem:[#allocation8] ss:$0 sm:$0xff]  ;;  %v2897_v34 = vld [vmem:[#allocation10] ss:$0 sm:$0xff]  ;;  %vm318_vm2 = vcmask 64512   ;;  %s3893_s30 = smov 112  }
  0xbc   :  { %3119 = vmatprep.mubr.msk.bf16.mxu0 %vm3892_vm1, %v3891_v15  ;;  %3117 = vmatprep.subr.bf16.mxu0 %v3891_v15  ;;  %s3894_s10 = smov 120   ;;  %s3895_s28 = smov 104   ;;  %vm4196_vm3 = vmpackc.low %vm318_vm2, %vm318_vm2  ;;  %vm679_vm4 = vcmask 130048   ;;  %vm1144_vm5 = vcmask 195584   ;;  %vm1387_vm6 = vcmask 523264   ;;  %vm2874_vm7 = vcmask 254976  }
  0xbd   :  { %s3896_s29 = smov 96   ;;  %s3897_s0 = smov 64  }
  0xbe   :  { %s3898_s24 = smov 24  }
  0xbf   :  { %191 = vadd.xlane.f32.xlu0 %v190_v3  ;;  %3118 = vmatpush3.bf16.msra.mxu0 %v3531_v16 }
  0xc0   :  { %v2895_v25 = vld [vmem:[%s4613_s1] ss:$0 sm:$0xff] }
 0x148   :  { %v189_v4 = vpop.xlane.xlu0 %188 }
 0x149   :  { %v194_v5 = vmul.f32 0.03125, %v189_v4 }
 0x14b   :  { %v196_v6 = vsub.f32 %v182_v0, %v194_v5  ;;  %v4228_v5 = vld [vmem:[#allocation5 + $0x8] sm:$0xff] }
 0x14c   :  { %v192_v7 = vpop.xlane.xlu0 %191 }
 0x14d   :  { %v195_v8 = vmul.f32 0.03125, %v192_v7  ;;  %v198_v9 = vmul.f32 %v196_v6, %v196_v6 }
 0x14f   :  { %v197_v10 = vsub.f32 %v183_v1, %v195_v8  ;;  %v200_v11 = vsel %vm186_vm0, %v198_v9, 0.0  ;;  %v4230_v8 = vld [vmem:[#allocation5] sm:$0xff] }
 0x150   :  { %201 = vadd.xlane.f32.xlu1 %v200_v11 }
 0x151   :  { %v199_v12 = vmul.f32 %v197_v10, %v197_v10 }
 0x153   :  { %v203_v13 = vsel %vm186_vm0, %v199_v12, 0.0 }
 0x154   :  { %204 = vadd.xlane.f32.xlu1 %v203_v13 }
 0x1dd   :  { %v202_v17 = vpop.xlane.xlu1 %201 }
 0x1de   :  { %v206_v18 = vmul.f32 0.03125, %v202_v17 }
 0x1e0   :  { %v208_v19 = vadd.f32 1e-12, %v206_v18 }
 0x1e1   :  { %v205_v20 = vpop.xlane.xlu1 %204 }
 0x1e2   :  { %3552 = vrsqrt.f32 %v208_v19  ;;  %v207_v21 = vmul.f32 0.03125, %v205_v20 }
 0x1e4   :  { %v209_v22 = vadd.f32 1e-12, %v207_v21 }
 0x1e6   :  { %3554 = vrsqrt.f32 %v209_v22 }
 0x1ec   :  { %v3553_v23 = vpop.eup %3552 }
 0x1ed   :  { %v212_v24 = vmul.f32 %v3553_v23, %v196_v6 }
 0x1ef   :  { %v220_v28 = vmul.f32 %v2895_v25, %v212_v24 }
 0x1f0   :  { %v3555_v26 = vpop.eup %3554 }
 0x1f1   :  { %v213_v27 = vmul.f32 %v3555_v26, %v197_v10  ;;  %v4169_v31 = vadd.f32 %v2896_v29, %v220_v28 }
 0x1f3   :  { %v221_v30 = vmul.f32 %v2895_v25, %v213_v27 }
 0x1f5   :  { %v4171_v32 = vadd.f32 %v2896_v29, %v221_v30 }
 0x1f7   :  { %v232_v33 = vpack.c.bf16 %v4171_v32, %v4169_v31 }
 0x1f9   :  { %3120 = vmatmul.mubr.msk.bf16.vlgmr.msra.gmra.mrb[0].mxu0 %vm186_vm0, %v232_v33 }
 0x2cc   :  { %v293_v35 = vpop.f32.mrb[0].mxu0 }
 0x2cd   :  { %v294_v36 = vadd.f32 %v2897_v34, %v293_v35  ;;  %v3121_v37 = vpop.f32.mrb[1].mxu0 }
 0x2ce   :  { %v296_v38 = vpop.f32.mrb[2].mxu0 }
 0x2cf   :  { %306 = vrot.lane.b32.xlu1 %v294_v36, %s3893_s30  ;;  %302 = vrot.lane.b32.xlu0 %v294_v36, %s3894_s10  ;;  %v3122_v39 = vpop.f32.mrb[3].mxu0  ;;  %v297_v40 = vadd.f32 %v2897_v34, %v296_v38 }
 0x2d0   :  { %3127 = vmatprep.mubr.msk.f32.mxu1 %vm318_vm2, %v294_v36 }
 0x2d1   :  { %v4181_v41 = vpack.i.bf16 %v297_v40, %v294_v36 }
 0x2d3   :  { %310 = vrot.lane.b32.xlu0 %v294_v36, %s3895_s28  ;;  %304 = vrot.lane.b32.xlu1 %v297_v40, %s3894_s10 }
 0x2d7   :  { %3421 = vrot.lane.b32.xlu0 %v4181_v41, %s3896_s29  ;;  %308 = vrot.lane.b32.xlu1 %v297_v40, %s3893_s30 }
 0x2db   :  { %312 = vrot.lane.b32.xlu1 %v297_v40, %s3895_s28 }
 0x341   :  { %v307_v42 = vpop.permute.xlu1 %306  ;;  %v303_v43 = vpop.permute.xlu0 %302 }
 0x342   :  { %3134 = vmatprep.mubr.msk.f32.mxu0 %vm318_vm2, %v303_v43 }
 0x345   :  { %v311_v44 = vpop.permute.xlu0 %310  ;;  %v305_v45 = vpop.permute.xlu1 %304 }
 0x346   :  { %v4188_v46 = vpack.i.bf16 %v305_v45, %v303_v43 }
 0x348   :  { %3426 = vrot.lane.b32.xlu1 %v4188_v46, %s3896_s29 }
 0x349   :  { %v3422_v47 = vpop.permute.xlu0 %3421  ;;  %v309_v48 = vpop.permute.xlu1 %308 }
 0x34a   :  { %v3424_v49 = vunpack.i.h.bf16 %v3422_v47  ;;  %v3423_v50 = vunpack.i.l.bf16 %v3422_v47  ;;  %v4192_v51 = vpack.i.bf16 %v309_v48, %v307_v42 }
 0x34c   :  { %3431 = vrot.lane.b32.xlu0 %v4192_v51, %s3896_s29  ;;  %v3314_v53 = vpack.c.bf16 %v3424_v49, %v3423_v50 }
 0x34d   :  { %v313_v54 = vpop.permute.xlu1 %312 }
 0x34e   :  { %v4202_v55 = vpack.i.bf16 %v313_v54, %v311_v44  ;;  %3316 = vmatprep.subr.msk.bf16.mxu1 %vm4196_vm3, %v3314_v53 }
 0x34f   :  { %3319 = vmatpush3.bf16.xpose.msk.msra.mxu1 %vm4196_vm3, %v3314_v53 }
 0x350   :  { %3436 = vrot.lane.b32.xlu1 %v4202_v55, %s3896_s29 }
 0x356   :  { %3128 = vmatmul.mubr.msk.f32.vlgmr.msra.gmra.mrb[0].mxu1 %vm318_vm2, %v297_v40 }
 0x357   :  { %3141 = vmatprep.mubr.msk.f32.mxu1 %vm318_vm2, %v307_v42 }
 0x3ba   :  { %v3427_v56 = vpop.permute.xlu1 %3426 }
 0x3bb   :  { %v3429_v57 = vunpack.i.h.bf16 %v3427_v56  ;;  %v3428_v58 = vunpack.i.l.bf16 %v3427_v56 }
 0x3bd   :  { %v3320_v59 = vpack.c.bf16 %v3429_v57, %v3428_v58 }
 0x3be   :  { %v3432_v60 = vpop.permute.xlu0 %3431 }
 0x3bf   :  { %v3434_v61 = vunpack.i.h.bf16 %v3432_v60  ;;  %v3433_v62 = vunpack.i.l.bf16 %v3432_v60  ;;  %3322 = vmatprep.subr.msk.bf16.mxu0 %vm4196_vm3, %v3320_v59 }
 0x3c0   :  { %3325 = vmatpush3.bf16.xpose.msk.msra.mxu0 %vm4196_vm3, %v3320_v59 }
 0x3c1   :  { %v3326_v63 = vpack.c.bf16 %v3434_v61, %v3433_v62 }
 0x3c2   :  { %v3437_v0 = vpop.permute.xlu1 %3436 }
 0x3c3   :  { %v3439_v1 = vunpack.i.h.bf16 %v3437_v0  ;;  %v3438_v2 = vunpack.i.l.bf16 %v3437_v0  ;;  %3328 = vmatprep.subr.msk.bf16.mxu1 %vm4196_vm3, %v3326_v63 }
 0x3c4   :  { %3331 = vmatpush3.bf16.xpose.msk.msra.mxu1 %vm4196_vm3, %v3326_v63 }
 0x3c5   :  { %v3332_v3 = vpack.c.bf16 %v3439_v1, %v3438_v2 }
 0x3c7   :  { %3135 = vmatmul.mubr.msk.f32.vlgmr.msra.gmra.mrb[4].mxu0 %vm318_vm2, %v305_v45  ;;  %3334 = vmatprep.subr.msk.bf16.mxu0 %vm4196_vm3, %v3332_v3 }
 0x3c8   :  { %3337 = vmatpush3.bf16.xpose.msk.msra.mxu0 %vm4196_vm3, %v3332_v3  ;;  %3148 = vmatprep.mubr.msk.f32.mxu0 %vm318_vm2, %v311_v44 }
 0x3cb   :  { %3142 = vmatmul.mubr.msk.f32.vlgmr.msra.gmra.mrb[2].mxu1 %vm318_vm2, %v309_v48 }
 0x3cf   :  { %3149 = vmatmul.mubr.msk.f32.vlgmr.msra.gmra.mrb[6].mxu0 %vm318_vm2, %v313_v54 }
 0x429   :  { %v3129_v4 = vpop.f32.mrb[0].mxu1 }
 0x42a   :  { %v664_v6 = vmul.f32 0.35355338, %v3129_v4  ;;  %v393_v7 = vpop.f32.mrb[1].mxu1 }
 0x42b   :  { %v663_v9 = vmul.f32 0.35355338, %v393_v7 }
 0x42c   :  { %v672_v10 = vadd.f32 %v664_v6, %v4228_v5 }
 0x42d   :  { %v671_v11 = vadd.f32 %v663_v9, %v4230_v8 }
 0x42e   :  { %v683_v12 = vsel %vm679_vm4, %v672_v10, -inf }
 0x42f   :  { %684 = vmax.xlane.f32.xlu1 %v683_v12  ;;  %v680_v13 = vsel %vm679_vm4, %v671_v11, -inf }
 0x430   :  { %681 = vmax.xlane.f32.xlu0 %v680_v13 }
 0x49a   :  { %v3136_v14 = vpop.f32.mrb[4].mxu0 }
 0x49b   :  { %v666_v16 = vmul.f32 0.35355338, %v3136_v14  ;;  %v480_v17 = vpop.f32.mrb[5].mxu0 }
 0x49c   :  { %v665_v18 = vmul.f32 0.35355338, %v480_v17 }
 0x49d   :  { %v674_v19 = vadd.f32 %v666_v16, %v4228_v5 }
 0x49e   :  { %v3143_v20 = vpop.f32.mrb[2].mxu1  ;;  %v673_v24 = vadd.f32 %v665_v18, %v4230_v8 }
 0x49f   :  { %v668_v21 = vmul.f32 0.35355338, %v3143_v20  ;;  %v567_v22 = vpop.f32.mrb[3].mxu1  ;;  %v689_v23 = vsel %vm679_vm4, %v674_v19, -inf }
 0x4a0   :  { %v667_v25 = vmul.f32 0.35355338, %v567_v22  ;;  %690 = vmax.xlane.f32.xlu0 %v689_v23  ;;  %v686_v33 = vsel %vm679_vm4, %v673_v24, -inf }
 0x4a1   :  { %v676_v26 = vadd.f32 %v668_v21, %v4228_v5 }
 0x4a2   :  { %v3150_v27 = vpop.f32.mrb[6].mxu0  ;;  %v675_v34 = vadd.f32 %v667_v25, %v4230_v8 }
 0x4a3   :  { %v670_v28 = vmul.f32 0.35355338, %v3150_v27  ;;  %v654_v29 = vpop.f32.mrb[7].mxu0  ;;  %v695_v30 = vsel %vm679_vm4, %v676_v26, -inf }
 0x4a4   :  { %v669_v35 = vmul.f32 0.35355338, %v654_v29  ;;  %696 = vmax.xlane.f32.xlu1 %v695_v30  ;;  %687 = vmax.xlane.f32.xlu0 %v686_v33  ;;  %v692_v37 = vsel %vm679_vm4, %v675_v34, -inf }
 0x4a5   :  { %v678_v36 = vadd.f32 %v670_v28, %v4228_v5 }
 0x4a6   :  { %v677_v39 = vadd.f32 %v669_v35, %v4230_v8 }
 0x4a7   :  { %v701_v38 = vsel %vm679_vm4, %v678_v36, -inf }
 0x4a8   :  { %693 = vmax.xlane.f32.xlu0 %v692_v37  ;;  %702 = vmax.xlane.f32.xlu1 %v701_v38  ;;  %v698_v40 = vsel %vm679_vm4, %v677_v39, -inf }
 0x4ac   :  { %699 = vmax.xlane.f32.xlu0 %v698_v40 }
 0x4bc   :  { %v685_v42 = vpop.xlane.xlu1 %684 }
 0x4bd   :  { %v705_v43 = vsub.f32 %v672_v10, %v685_v42  ;;  %v682_v44 = vpop.xlane.xlu0 %681 }
 0x4be   :  { %v704_v45 = vsub.f32 %v671_v11, %v682_v44 }
 0x4bf   :  { %v714_v47 = vmul.f32 1.442695, %v705_v43 }
 0x4c0   :  { %v712_v48 = vmul.f32 1.442695, %v704_v45 }
 0x4c1   :  { %3556 = vpow2.f32 %v714_v47 }
 0x4c2   :  { %3558 = vpow2.f32 %v712_v48 }
 0x4cb   :  { %v4248_v49 = vpop.eup %3556 }
 0x4cc   :  { %v3559_v50 = vpop.eup %3558  ;;  %v731_v53 = vsel %vm679_vm4, %v4248_v49, 0.0 }
 0x4cd   :  { %732 = vadd.xlane.f32.xlu1 %v731_v53  ;;  %v728_v54 = vsel %vm679_vm4, %v3559_v50, 0.0 }
 0x4ce   :  { %729 = vadd.xlane.f32.xlu0 %v728_v54 }
 0x52d   :  { %v691_v56 = vpop.xlane.xlu0 %690 }
 0x52e   :  { %v707_v57 = vsub.f32 %v674_v19, %v691_v56 }
 0x530   :  { %v718_v58 = vmul.f32 1.442695, %v707_v57 }
 0x531   :  { %v697_v59 = vpop.xlane.xlu1 %696  ;;  %v688_v60 = vpop.xlane.xlu0 %687 }
 0x532   :  { %3560 = vpow2.f32 %v718_v58  ;;  %v709_v61 = vsub.f32 %v676_v26, %v697_v59  ;;  %v706_v62 = vsub.f32 %v673_v24, %v688_v60 }
 0x534   :  { %v722_v63 = vmul.f32 1.442695, %v709_v61  ;;  %v716_v0 = vmul.f32 1.442695, %v706_v62 }
 0x535   :  { %v694_v1 = vpop.xlane.xlu0 %693  ;;  %v703_v2 = vpop.xlane.xlu1 %702 }
 0x536   :  { %3562 = vpow2.f32 %v722_v63  ;;  %v708_v3 = vsub.f32 %v675_v34, %v694_v1  ;;  %v711_v4 = vsub.f32 %v678_v36, %v703_v2 }
 0x537   :  { %3564 = vpow2.f32 %v716_v0 }
 0x538   :  { %v720_v6 = vmul.f32 1.442695, %v708_v3  ;;  %v726_v7 = vmul.f32 1.442695, %v711_v4  ;;  %v3532_v4 = vld [vmem:[%s4585_s7] sm:$0xff]  }
 0x539   :  { %v700_v9 = vpop.xlane.xlu0 %699 }
 0x53a   :  { %3566 = vpow2.f32 %v720_v6  ;;  %v710_v10 = vsub.f32 %v677_v39, %v700_v9  ;;  %v3533_v9 = vld [vmem:[%s4585_s7 + $0x8] sm:$0xff]  }
 0x53b   :  { %3568 = vpow2.f32 %v726_v7 }
 0x53c   :  { %v4253_v11 = vpop.eup %3560  ;;  %v724_v12 = vmul.f32 1.442695, %v710_v10 }
 0x53d   :  { %v737_v13 = vsel %vm679_vm4, %v4253_v11, 0.0 }
 0x53e   :  { %3570 = vpow2.f32 %v724_v12  ;;  %738 = vadd.xlane.f32.xlu1 %v737_v13 }
 0x540   :  { %v4257_v14 = vpop.eup %3562 }
 0x541   :  { %v4259_v16 = vpop.eup %3564  ;;  %v743_v17 = vsel %vm679_vm4, %v4257_v14, 0.0 }
 0x542   :  { %744 = vadd.xlane.f32.xlu1 %v743_v17  ;;  %v734_v18 = vsel %vm679_vm4, %v4259_v16, 0.0 }
 0x543   :  { %735 = vadd.xlane.f32.xlu0 %v734_v18 }
 0x544   :  { %v3567_v19 = vpop.eup %3566 }
 0x545   :  { %v4265_v20 = vpop.eup %3568  ;;  %v740_v21 = vsel %vm679_vm4, %v3567_v19, 0.0 }
 0x546   :  { %v749_v22 = vsel %vm679_vm4, %v4265_v20, 0.0 }
 0x547   :  { %750 = vadd.xlane.f32.xlu1 %v749_v22  ;;  %741 = vadd.xlane.f32.xlu0 %v740_v21 }
 0x548   :  { %v4270_v23 = vpop.eup %3570 }
 0x549   :  { %v746_v24 = vsel %vm679_vm4, %v4270_v23, 0.0 }
 0x54b   :  { %747 = vadd.xlane.f32.xlu0 %v746_v24 }
 0x558   :  { %3446 = vrot.lane.b32.xlu1 %v4188_v46, %s3897_s0 }
 0x55a   :  { %v733_v28 = vpop.xlane.xlu1 %732 }
 0x55b   :  { %v730_v25 = vpop.xlane.xlu0 %729 }
 0x55c   :  { %3451 = vrot.lane.b32.xlu1 %v4192_v51, %s3897_s0  ;;  %3572 = vrcp.f32 %v730_v25 }
 0x55d   :  { %3574 = vrcp.f32 %v733_v28 }
 0x560   :  { %3456 = vrot.lane.b32.xlu1 %v4202_v55, %s3897_s0 }
 0x561   :  { %3441 = vrot.lane.b32.xlu0 %v4181_v41, %s3897_s0 }
 0x566   :  { %v3573_v26 = vpop.eup %3572 }
 0x567   :  { %v760_v27 = vmul.f32 %v3573_v26, %v3559_v50  ;;  %v3575_v43 = vpop.eup %3574 }
 0x568   :  { %v761_v59 = vmul.f32 %v3575_v43, %v4248_v49 }
 0x569   :  { %3155 = vmatprep.mubr.msk.f32.mxu1 %vm679_vm4, %v760_v27 }
 0x5cb   :  { %v739_v29 = vpop.xlane.xlu1 %738 }
 0x5cf   :  { %v745_v30 = vpop.xlane.xlu1 %744 }
 0x5d0   :  { %v736_v33 = vpop.xlane.xlu0 %735  ;;  %3576 = vrcp.f32 %v745_v30 }
 0x5d4   :  { %v751_v46 = vpop.xlane.xlu1 %750  ;;  %v742_v34 = vpop.xlane.xlu0 %741 }
 0x5d5   :  { %3578 = vrcp.f32 %v742_v34 }
 0x5d6   :  { %3580 = vrcp.f32 %v736_v33 }
 0x5d7   :  { %3582 = vrcp.f32 %v739_v29 }
 0x5d8   :  { %v3447_v51 = vpop.permute.xlu1 %3446  ;;  %v748_v35 = vpop.xlane.xlu0 %747 }
 0x5d9   :  { %3584 = vrcp.f32 %v748_v35  ;;  %v3449_v55 = vunpack.i.h.bf16 %v3447_v51  ;;  %v3448_v41 = vunpack.i.l.bf16 %v3447_v51 }
 0x5da   :  { %3586 = vrcp.f32 %v751_v46  ;;  %v3577_v44 = vpop.eup %3576 }
 0x5db   :  { %v3342_v54 = vpack.c.bf16 %v3449_v55, %v3448_v41  ;;  %v765_v60 = vmul.f32 %v3577_v44, %v4257_v14  ;;  %v2925_v55 = vld [vmem:[#allocation11] ss:$0 sm:$0xff] }
 0x5dc   :  { %v3452_v36 = vpop.permute.xlu1 %3451  ;;  %v3442_v37 = vpop.permute.xlu0 %3441 }
 0x5dd   :  { %v3454_v38 = vunpack.i.h.bf16 %v3452_v36  ;;  %v3453_v39 = vunpack.i.l.bf16 %v3452_v36  ;;  %v3444_v40 = vunpack.i.h.bf16 %v3442_v37  ;;  %v3443_v42 = vunpack.i.l.bf16 %v3442_v37 }
 0x5df   :  { %v3346_v45 = vpack.c.bf16 %v3454_v38, %v3453_v39  ;;  %v3338_v47 = vpack.c.bf16 %v3444_v40, %v3443_v42  ;;  %v3579_v48 = vpop.eup %3578 }
 0x5e0   :  { %v3457_v50 = vpop.permute.xlu1 %3456  ;;  %v3581_v53 = vpop.eup %3580  ;;  %v764_v58 = vmul.f32 %v3579_v48, %v3567_v19 }
 0x5e1   :  { %v3459_v56 = vunpack.i.h.bf16 %v3457_v50  ;;  %v3458_v57 = vunpack.i.l.bf16 %v3457_v50  ;;  %3339 = vmatprep.subr.bf16.mxu1 %v3338_v47  ;;  %3347 = vmatprep.subr.bf16.mxu0 %v3346_v45  ;;  %v3583_v61 = vpop.eup %3582  ;;  %v762_v62 = vmul.f32 %v3581_v53, %v4259_v16 }
 0x5e2   :  { %3341 = vmatpush3.bf16.msra.mxu1 %v3338_v47  ;;  %3349 = vmatpush3.bf16.msra.mxu0 %v3346_v45  ;;  %v763_v49 = vmul.f32 %v3583_v61, %v4253_v11 }
 0x5e3   :  { %3169 = vmatprep.mubr.msk.f32.mxu0 %vm679_vm4, %v764_v58  ;;  %3343 = vmatprep.subr.bf16.mxu1 %v3342_v54  ;;  %v3585_v63 = vpop.eup %3584  ;;  %v3350_v0 = vpack.c.bf16 %v3459_v56, %v3458_v57 }
 0x5e4   :  { %3179 = vmatprep.subr.bf16.mxu0 %v3891_v15  ;;  %v3587_v1 = vpop.eup %3586  ;;  %v766_v2 = vmul.f32 %v3585_v63, %v4270_v23 }
 0x5e5   :  { %3156 = vmatmul.mubr.msk.f32.vlgmr.msra.gmra.mrb[4].mxu1 %vm679_vm4, %v761_v59  ;;  %3170 = vmatmul.mubr.msk.f32.vlgmr.msra.gmra.mrb[8].mxu0 %vm679_vm4, %v765_v60  ;;  %v767_v3 = vmul.f32 %v3587_v1, %v4265_v20  ;;  %v3535_v60 = vld [vmem:[%s4589_s11 + $0x8] sm:$0xff]  }
 0x5e6   :  { %3345 = vmatpush3.bf16.msra.mxu1 %v3342_v54  ;;  %3162 = vmatprep.mubr.msk.f32.mxu1 %vm679_vm4, %v762_v62 }
 0x5e7   :  { %3351 = vmatprep.subr.bf16.mxu1 %v3350_v0  ;;  %3183 = vmatprep.mubr.msk.bf16.mxu0 %vm3892_vm1, %v3891_v15 }
 0x5e8   :  { %3180 = vmatpush3.bf16.msra.mxu0 %v3532_v4  ;;  %v2929_v4 = vld [vmem:[#allocation13] ss:$0 sm:$0xff] }
 0x5e9   :  { %3163 = vmatmul.mubr.msk.f32.vlgmr.msra.gmra.mrb[6].mxu1 %vm679_vm4, %v763_v49  ;;  %3181 = vmatprep.subr.bf16.mxu0 %v3891_v15 }
 0x5ea   :  { %3353 = vmatpush3.bf16.msra.mxu1 %v3350_v0  ;;  %3176 = vmatprep.mubr.msk.f32.mxu1 %vm679_vm4, %v766_v2 }
 0x5eb   :  { %3187 = vmatprep.subr.bf16.mxu1 %v3891_v15 }
 0x5ec   :  { %3182 = vmatpush3.bf16.msra.mxu0 %v3533_v9 }
 0x5ed   :  { %3177 = vmatmul.mubr.msk.f32.vlgmr.msra.gmra.mrb[8].mxu1 %vm679_vm4, %v767_v3  ;;  %3195 = vmatprep.subr.bf16.mxu0 %v3891_v15 }
 0x5ee   :  { %3191 = vmatprep.mubr.msk.bf16.mxu1 %vm3892_vm1, %v3891_v15 }
 0x6b8   :  { %v3157_v6 = vpop.f32.mrb[4].mxu1  ;;  %v3171_v7 = vpop.f32.mrb[8].mxu0 }
 0x6b9   :  { %v846_v10 = vpop.f32.mrb[5].mxu1  ;;  %v1020_v11 = vpop.f32.mrb[9].mxu0 }
 0x6ba   :  { %v3465_v12 = vpack.i.bf16 %v3171_v7, %v1020_v11 }
 0x6bc   :  { %3466 = vrot.lane.b32.xlu1 %v3465_v12, %s3884_s21  ;;  %v3164_v13 = vpop.f32.mrb[6].mxu1 }
 0x6bd   :  { %v933_v14 = vpop.f32.mrb[7].mxu1 }
 0x6be   :  { %v3460_v16 = vpack.i.bf16 %v3164_v13, %v933_v14 }
 0x6c0   :  { %3461 = vrot.lane.b32.xlu0 %v3460_v16, %s4610_s23  ;;  %v3178_v17 = vpop.f32.mrb[8].mxu1  ;;  %v3536_v16 = vld [vmem:[%s4591_s13] sm:$0xff]  }
 0x6c1   :  { %v1107_v18 = vpop.f32.mrb[9].mxu1 }
 0x6c2   :  { %v3470_v19 = vpack.i.bf16 %v3178_v17, %v1107_v18  ;;  %v3537_v17 = vld [vmem:[%s4591_s13 + $0x8] sm:$0xff]   ;;  %v3538_v18 = vld [vmem:[%s4591_s13 + $0x10] sm:$0xff]  }
 0x6c4   :  { %3471 = vrot.lane.b32.xlu0 %v3470_v19, %s3898_s24  ;;  %v3539_v19 = vld [vmem:[%s4591_s13 + $0x18] sm:$0xff]  }
 0x72e   :  { %v3467_v21 = vpop.permute.xlu1 %3466 }
 0x72f   :  { %v3469_v26 = vunpack.i.h.bf16 %v3467_v21  ;;  %v3468_v27 = vunpack.i.l.bf16 %v3467_v21 }
 0x732   :  { %v3462_v20 = vpop.permute.xlu0 %3461 }
 0x733   :  { %v3464_v22 = vunpack.i.h.bf16 %v3462_v20  ;;  %v3463_v23 = vunpack.i.l.bf16 %v3462_v20  ;;  %v2931_v20 = vld [vmem:[#allocation16] ss:$0 sm:$0xff] }
 0x735   :  { %v1141_v24 = vsel %vm318_vm2, %v3157_v6, %v3464_v22  ;;  %v1140_v25 = vsel %vm318_vm2, %v846_v10, %v3463_v23  ;;  %v2930_v10 = vld [vmem:[#allocation14] ss:$0 sm:$0xff] }
 0x736   :  { %v3472_v28 = vpop.permute.xlu0 %3471  ;;  %v1142_v33 = vsel %vm679_vm4, %v1140_v25, %v3468_v27  ;;  %v1143_v46 = vsel %vm679_vm4, %v1141_v24, %v3469_v26 }
 0x737   :  { %v3474_v29 = vunpack.i.h.bf16 %v3472_v28  ;;  %v3473_v30 = vunpack.i.l.bf16 %v3472_v28 }
 0x739   :  { %v1146_v34 = vsel %vm1144_vm5, %v1143_v46, %v3474_v29  ;;  %v1145_v51 = vsel %vm1144_vm5, %v1142_v33, %v3473_v30 }
 0x73a   :  { %v1147_v35 = vpack.c.bf16 %v1146_v34, %v1145_v51 }
 0x73c   :  { %3184 = vmatmul.mubr.msk.bf16.vlgmr.msra.gmra.mrb[12].mxu0 %vm186_vm0, %v1147_v35 }
 0x73d   :  { %3203 = vmatprep.mubr.msk.bf16.mxu0 %vm3892_vm1, %v3891_v15  ;;  %3196 = vmatpush3.bf16.msra.mxu0 %v3536_v16  ;;  %v2941_v16 = vld [vmem:[%s4593_s15] ss:$0 sm:$0xff] }
 0x73e   :  { %3197 = vmatprep.subr.bf16.mxu0 %v3891_v15 }
 0x741   :  { %3198 = vmatpush3.bf16.msra.mxu0 %v3537_v17 }
 0x742   :  { %3199 = vmatprep.subr.bf16.mxu0 %v3891_v15 }
 0x745   :  { %3200 = vmatpush3.bf16.msra.mxu0 %v3538_v18 }
 0x746   :  { %3201 = vmatprep.subr.bf16.mxu0 %v3891_v15 }
 0x749   :  { %3202 = vmatpush3.bf16.msra.mxu0 %v3539_v19 }
 0x80f   :  { %v1208_v41 = vpop.f32.mrb[12].mxu0 }
 0x810   :  { %v1209_v36 = vadd.f32 %v2925_v55, %v1208_v41  ;;  %v3185_v37 = vpop.f32.mrb[13].mxu0 }
 0x811   :  { %v1211_v38 = vpop.f32.mrb[14].mxu0 }
 0x812   :  { %v1212_v39 = vadd.f32 %v2925_v55, %v1211_v38  ;;  %v3186_v40 = vpop.f32.mrb[15].mxu0  ;;  %v1215_v42 = vadd.f32 %v1209_v36, %v4169_v31 }
 0x814   :  { %v1219_v43 = vsel %vm186_vm0, %v1215_v42, 0.0  ;;  %v1216_v44 = vadd.f32 %v1212_v39, %v4171_v32  ;;  %v3534_v32 = vld [vmem:[%s4589_s11] sm:$0xff]  }
 0x815   :  { %1220 = vadd.xlane.f32.xlu1 %v1219_v43  ;;  %3188 = vmatpush3.bf16.msra.mxu1 %v3534_v32 }
 0x816   :  { %v1222_v45 = vsel %vm186_vm0, %v1216_v44, 0.0  ;;  %3189 = vmatprep.subr.bf16.mxu1 %v3891_v15 }
 0x817   :  { %1223 = vadd.xlane.f32.xlu0 %v1222_v45  ;;  %v2935_v45 = vld [vmem:[%s4592_s14] ss:$0 sm:$0xff] }
 0x819   :  { %3190 = vmatpush3.bf16.msra.mxu1 %v3535_v60 }
 0x81a   :  { %3207 = vmatprep.subr.bf16.mxu1 %v3891_v15 }
 0x8a2   :  { %v1221_v47 = vpop.xlane.xlu1 %1220 }
 0x8a3   :  { %v1225_v48 = vmul.f32 0.03125, %v1221_v47 }
 0x8a4   :  { %v1224_v50 = vpop.xlane.xlu0 %1223 }
 0x8a5   :  { %v1227_v53 = vsub.f32 %v1215_v42, %v1225_v48  ;;  %v1226_v54 = vmul.f32 0.03125, %v1224_v50 }
 0x8a7   :  { %v1228_v56 = vsub.f32 %v1216_v44, %v1226_v54  ;;  %v1229_v57 = vmul.f32 %v1227_v53, %v1227_v53 }
 0x8a9   :  { %v1231_v58 = vsel %vm186_vm0, %v1229_v57, 0.0  ;;  %v1230_v59 = vmul.f32 %v1228_v56, %v1228_v56 }
 0x8aa   :  { %1232 = vadd.xlane.f32.xlu0 %v1231_v58 }
 0x8ab   :  { %v1234_v31 = vsel %vm186_vm0, %v1230_v59, 0.0 }
 0x8ae   :  { %1235 = vadd.xlane.f32.xlu0 %v1234_v31 }
 0x937   :  { %v1233_v61 = vpop.xlane.xlu0 %1232 }
 0x938   :  { %v1237_v62 = vmul.f32 0.03125, %v1233_v61 }
 0x93a   :  { %v1239_v63 = vadd.f32 1e-12, %v1237_v62 }
 0x93b   :  { %v1236_v0 = vpop.xlane.xlu0 %1235 }
 0x93c   :  { %3588 = vrsqrt.f32 %v1239_v63  ;;  %v1238_v49 = vmul.f32 0.03125, %v1236_v0 }
 0x93e   :  { %v1240_v1 = vadd.f32 1e-12, %v1238_v49 }
 0x940   :  { %3590 = vrsqrt.f32 %v1240_v1 }
 0x946   :  { %v3589_v2 = vpop.eup %3588 }
 0x947   :  { %v1243_v3 = vmul.f32 %v3589_v2, %v1227_v53 }
 0x949   :  { %v1251_v7 = vmul.f32 %v2929_v4, %v1243_v3 }
 0x94a   :  { %v3591_v6 = vpop.eup %3590 }
 0x94b   :  { %v1244_v9 = vmul.f32 %v3591_v6, %v1228_v56  ;;  %v1259_v12 = vadd.f32 %v2930_v10, %v1251_v7  ;;  %v3541_v6 = vld [vmem:[%s4583_s5 + $0x18] sm:$0xff]  }
 0x94d   :  { %v1252_v11 = vmul.f32 %v2929_v4, %v1244_v9  ;;  %v3540_v4 = vld [vmem:[%s4583_s5 + $0x10] sm:$0xff]  }
 0x94f   :  { %v1260_v13 = vadd.f32 %v2930_v10, %v1252_v11 }
 0x951   :  { %v1261_v14 = vpack.c.bf16 %v1260_v13, %v1259_v12 }
 0x953   :  { %3192 = vmatmul.mubr.msk.bf16.vlgmr.msra.gmra.mrb[12].mxu1 %vm186_vm0, %v1261_v14 }
 0x954   :  { %3211 = vmatprep.mubr.msk.bf16.mxu1 %vm3892_vm1, %v3891_v15  ;;  %3208 = vmatpush3.bf16.msra.mxu1 %v3540_v4 }
 0x955   :  { %3209 = vmatprep.subr.bf16.mxu1 %v3891_v15 }
 0x958   :  { %3210 = vmatpush3.bf16.msra.mxu1 %v3541_v6 }
 0xa26   :  { %v1322_v21 = vpop.f32.mrb[12].mxu1 }
 0xa27   :  { %v1323_v22 = vadd.f32 %v2931_v20, %v1322_v21  ;;  %v3193_v23 = vpop.f32.mrb[13].mxu1  ;;  %v2942_v21 = vld [vmem:[%s4594_s16] ss:$0 sm:$0xff] }
 0xa28   :  { %v1325_v24 = vpop.f32.mrb[14].mxu1 }
 0xa29   :  { %v1331_v25 = vmul.f32 0.044715, %v1323_v22  ;;  %v1326_v26 = vadd.f32 %v2931_v20, %v1325_v24  ;;  %v3194_v27 = vpop.f32.mrb[15].mxu1  ;;  %v1329_v38 = vmul.f32 0.5, %v1323_v22 }
 0xa2b   :  { %v1333_v28 = vmul.f32 %v1331_v25, %v1323_v22  ;;  %v1332_v29 = vmul.f32 0.044715, %v1326_v26  ;;  %v1330_v39 = vmul.f32 0.5, %v1326_v26 }
 0xa2d   :  { %v1335_v30 = vmul.f32 %v1333_v28, %v1323_v22  ;;  %v1334_v33 = vmul.f32 %v1332_v29, %v1326_v26 }
 0xa2f   :  { %v1337_v46 = vadd.f32 %v1335_v30, %v1323_v22  ;;  %v1336_v34 = vmul.f32 %v1334_v33, %v1326_v26 }
 0xa31   :  { %v1339_v51 = vmul.f32 0.7978846, %v1337_v46  ;;  %v1338_v35 = vadd.f32 %v1336_v34, %v1326_v26  ;;  %v2947_v26 = vld [vmem:[#allocation10 + $0x1] ss:$0 sm:$0xff] }
 0xa33   :  { %3592 = vtanh.f32 %v1339_v51  ;;  %v1340_v55 = vmul.f32 0.7978846, %v1338_v35 }
 0xa35   :  { %3594 = vtanh.f32 %v1340_v55 }
 0xa3d   :  { %v3593_v41 = vpop.eup %3592 }
 0xa3e   :  { %v1343_v36 = vadd.f32 1.0, %v3593_v41 }
 0xa3f   :  { %v3595_v37 = vpop.eup %3594 }
 0xa40   :  { %v1344_v40 = vadd.f32 1.0, %v3595_v37  ;;  %v1345_v42 = vmul.f32 %v1343_v36, %v1329_v38 }
 0xa42   :  { %v1346_v43 = vmul.f32 %v1344_v40, %v1330_v39 }
 0xa44   :  { %v1347_v44 = vpack.c.bf16 %v1346_v43, %v1345_v42 }
 0xa46   :  { %3204 = vmatmul.mubr.msk.bf16.vlgmr.msra.gmra.mrb[16].mxu0 %vm1387_vm6, %v1347_v44 }
 0xb19   :  { %v1425_v47 = vpop.f32.mrb[16].mxu0 }
 0xb1a   :  { %v1426_v48 = vadd.f32 %v2935_v45, %v1425_v47  ;;  %v3205_v50 = vpop.f32.mrb[17].mxu0 }
 0xb1b   :  { %v1428_v53 = vpop.f32.mrb[18].mxu0 }
 0xb1c   :  { %v1429_v54 = vadd.f32 %v2935_v45, %v1428_v53  ;;  %v3206_v56 = vpop.f32.mrb[19].mxu0  ;;  %v1432_v57 = vadd.f32 %v1426_v48, %v1259_v12 }
 0xb1e   :  { %v1436_v58 = vsel %vm186_vm0, %v1432_v57, 0.0  ;;  %v1433_v59 = vadd.f32 %v1429_v54, %v1260_v13 }
 0xb1f   :  { %1437 = vadd.xlane.f32.xlu1 %v1436_v58 }
 0xb20   :  { %v1439_v31 = vsel %vm186_vm0, %v1433_v59, 0.0 }
 0xb21   :  { %1440 = vadd.xlane.f32.xlu0 %v1439_v31 }
 0xbac   :  { %v1438_v32 = vpop.xlane.xlu1 %1437 }
 0xbad   :  { %v1442_v60 = vmul.f32 0.03125, %v1438_v32 }
 0xbae   :  { %v1441_v61 = vpop.xlane.xlu0 %1440 }
 0xbaf   :  { %v1444_v62 = vsub.f32 %v1432_v57, %v1442_v60  ;;  %v1443_v63 = vmul.f32 0.03125, %v1441_v61 }
 0xbb1   :  { %v1445_v0 = vsub.f32 %v1433_v59, %v1443_v63  ;;  %v1446_v49 = vmul.f32 %v1444_v62, %v1444_v62 }
 0xbb3   :  { %v1448_v1 = vsel %vm186_vm0, %v1446_v49, 0.0  ;;  %v1447_v2 = vmul.f32 %v1445_v0, %v1445_v0 }
 0xbb4   :  { %1449 = vadd.xlane.f32.xlu1 %v1448_v1 }
 0xbb5   :  { %v1451_v3 = vsel %vm186_vm0, %v1447_v2, 0.0 }
 0xbb6   :  { %1452 = vadd.xlane.f32.xlu0 %v1451_v3 }
 0xc41   :  { %v1450_v7 = vpop.xlane.xlu1 %1449 }
 0xc42   :  { %v1454_v9 = vmul.f32 0.03125, %v1450_v7 }
 0xc43   :  { %v1453_v10 = vpop.xlane.xlu0 %1452 }
 0xc44   :  { %v1456_v11 = vadd.f32 1e-12, %v1454_v9  ;;  %v1455_v12 = vmul.f32 0.03125, %v1453_v10 }
 0xc46   :  { %3596 = vrsqrt.f32 %v1456_v11  ;;  %v1457_v13 = vadd.f32 1e-12, %v1455_v12 }
 0xc48   :  { %3598 = vrsqrt.f32 %v1457_v13 }
 0xc50   :  { %v3597_v14 = vpop.eup %3596 }
 0xc51   :  { %v1460_v17 = vmul.f32 %v3597_v14, %v1444_v62 }
 0xc52   :  { %v3599_v18 = vpop.eup %3598 }
 0xc53   :  { %v1468_v19 = vmul.f32 %v2941_v16, %v1460_v17  ;;  %v1461_v20 = vmul.f32 %v3599_v18, %v1445_v0 }
 0xc55   :  { %v1469_v22 = vmul.f32 %v2941_v16, %v1461_v20  ;;  %v4375_v23 = vadd.f32 %v2942_v21, %v1468_v19 }
 0xc57   :  { %v4377_v24 = vadd.f32 %v2942_v21, %v1469_v22 }
 0xc59   :  { %v1478_v25 = vpack.c.bf16 %v4377_v24, %v4375_v23 }
 0xc5b   :  { %3212 = vmatmul.mubr.msk.bf16.vlgmr.msra.gmra.mrb[16].mxu1 %vm186_vm0, %v1478_v25 }
 0xd2e   :  { %v1541_v27 = vpop.f32.mrb[16].mxu1 }
 0xd2f   :  { %v1542_v28 = vadd.f32 %v2947_v26, %v1541_v27  ;;  %v3213_v29 = vpop.f32.mrb[17].mxu1 }
 0xd30   :  { %v1544_v30 = vpop.f32.mrb[18].mxu1 }
 0xd31   :  { %v1545_v33 = vadd.f32 %v2947_v26, %v1544_v30  ;;  %1550 = vrot.lane.b32.xlu1 %v1542_v28, %s3894_s10  ;;  %v3214_v46 = vpop.f32.mrb[19].mxu1  ;;  %3219 = vmatprep.mubr.msk.f32.mxu1 %vm318_vm2, %v1542_v28 }
 0xd33   :  { %1552 = vrot.lane.b32.xlu0 %v1545_v33, %s3894_s10  ;;  %v4389_v34 = vpack.i.bf16 %v1545_v33, %v1542_v28 }
 0xd35   :  { %1554 = vrot.lane.b32.xlu1 %v1542_v28, %s3893_s30 }
 0xd37   :  { %1560 = vrot.lane.b32.xlu0 %v1545_v33, %s3895_s28 }
 0xd39   :  { %1556 = vrot.lane.b32.xlu1 %v1545_v33, %s3893_s30  ;;  %s3900_s30 = smov [#allocation17]  }
 0xd3a   :  { %s2882_s10 = sshll.u32 %s3900_s30, 4  ;;  %s2883_s10 = int_to_ptr.vmem [resolvable:$true] %s2882_s10 }
 0xd3b   :  { %p3849_p3 = scmp.lt.s32.totalorder %s2883_s10, %s2883_s10 }
 0xd3d   :  { %1558 = vrot.lane.b32.xlu1 %v1542_v28, %s3895_s28 }
 0xd41   :  { %3476 = vrot.lane.b32.xlu1 %v4389_v34, %s3896_s29 }
 0xda3   :  { %v1551_v51 = vpop.permute.xlu1 %1550 }
 0xda4   :  { %3226 = vmatprep.mubr.msk.f32.mxu0 %vm318_vm2, %v1551_v51 }
 0xda5   :  { %v1553_v35 = vpop.permute.xlu0 %1552 }
 0xda6   :  { %v4394_v55 = vpack.i.bf16 %v1553_v35, %v1551_v51 }
 0xda7   :  { %v1555_v41 = vpop.permute.xlu1 %1554 }
 0xda8   :  { %3481 = vrot.lane.b32.xlu0 %v4394_v55, %s3896_s29 }
 0xda9   :  { %v1561_v38 = vpop.permute.xlu0 %1560 }
 0xdab   :  { %v1557_v36 = vpop.permute.xlu1 %1556 }
 0xdac   :  { %v4398_v37 = vpack.i.bf16 %v1557_v36, %v1555_v41 }
 0xdae   :  { %3486 = vrot.lane.b32.xlu1 %v4398_v37, %s3896_s29 }
 0xdaf   :  { %v1559_v39 = vpop.permute.xlu1 %1558 }
 0xdb0   :  { %v4402_v40 = vpack.i.bf16 %v1561_v38, %v1559_v39 }
 0xdb2   :  { %3491 = vrot.lane.b32.xlu0 %v4402_v40, %s3896_s29 }
 0xdb3   :  { %v3477_v42 = vpop.permute.xlu1 %3476 }
 0xdb4   :  { %v3479_v43 = vunpack.i.h.bf16 %v3477_v42  ;;  %v3478_v44 = vunpack.i.l.bf16 %v3477_v42 }
 0xdb6   :  { %v3354_v45 = vpack.c.bf16 %v3479_v43, %v3478_v44 }
 0xdb8   :  { %3356 = vmatprep.subr.msk.bf16.mxu1 %vm4196_vm3, %v3354_v45 }
 0xdb9   :  { %3359 = vmatpush3.bf16.xpose.msk.msra.mxu1 %vm4196_vm3, %v3354_v45 }
 0xdc0   :  { %3220 = vmatmul.mubr.msk.f32.vlgmr.msra.gmra.mrb[10].mxu1 %vm318_vm2, %v1545_v33 }
 0xdc1   :  { %3233 = vmatprep.mubr.msk.f32.mxu1 %vm318_vm2, %v1555_v41 }
 0xe1a   :  { %v3482_v47 = vpop.permute.xlu0 %3481 }
 0xe1b   :  { %v3484_v48 = vunpack.i.h.bf16 %v3482_v47  ;;  %v3483_v50 = vunpack.i.l.bf16 %v3482_v47 }
 0xe1d   :  { %v3360_v53 = vpack.c.bf16 %v3484_v48, %v3483_v50 }
 0xe1f   :  { %3362 = vmatprep.subr.msk.bf16.mxu0 %vm4196_vm3, %v3360_v53 }
 0xe20   :  { %v3487_v54 = vpop.permute.xlu1 %3486  ;;  %3365 = vmatpush3.bf16.xpose.msk.msra.mxu0 %vm4196_vm3, %v3360_v53 }
 0xe21   :  { %v3489_v56 = vunpack.i.h.bf16 %v3487_v54  ;;  %v3488_v57 = vunpack.i.l.bf16 %v3487_v54 }
 0xe23   :  { %v3366_v58 = vpack.c.bf16 %v3489_v56, %v3488_v57 }
 0xe24   :  { %v3492_v59 = vpop.permute.xlu0 %3491 }
 0xe25   :  { %v3494_v31 = vunpack.i.h.bf16 %v3492_v59  ;;  %v3493_v32 = vunpack.i.l.bf16 %v3492_v59  ;;  %3368 = vmatprep.subr.msk.bf16.mxu1 %vm4196_vm3, %v3366_v58 }
 0xe26   :  { %3371 = vmatpush3.bf16.xpose.msk.msra.mxu1 %vm4196_vm3, %v3366_v58 }
 0xe27   :  { %v3372_v60 = vpack.c.bf16 %v3494_v31, %v3493_v32  ;;  %3227 = vmatmul.mubr.msk.f32.vlgmr.msra.gmra.mrb[10].mxu0 %vm318_vm2, %v1553_v35 }
 0xe28   :  { %3240 = vmatprep.mubr.msk.f32.mxu0 %vm318_vm2, %v1559_v39 }
 0xe29   :  { %3374 = vmatprep.subr.msk.bf16.mxu0 %vm4196_vm3, %v3372_v60 }
 0xe2a   :  { %3377 = vmatpush3.bf16.xpose.msk.msra.mxu0 %vm4196_vm3, %v3372_v60 }
 0xe2d   :  { %3234 = vmatmul.mubr.msk.f32.vlgmr.msra.gmra.mrb[20].mxu1 %vm318_vm2, %v1557_v36 }
 0xe31   :  { %3241 = vmatmul.mubr.msk.f32.vlgmr.msra.gmra.mrb[20].mxu0 %vm318_vm2, %v1561_v38 }
 0xe93   :  { %v3221_v61 = vpop.f32.mrb[10].mxu1 }
 0xe94   :  { %v1911_v62 = vmul.f32 0.35355338, %v3221_v61  ;;  %v1640_v63 = vpop.f32.mrb[11].mxu1 }
 0xe95   :  { %v1910_v0 = vmul.f32 0.35355338, %v1640_v63 }
 0xe96   :  { %v1919_v49 = vadd.f32 %v1911_v62, %v4228_v5 }
 0xe97   :  { %v1918_v1 = vadd.f32 %v1910_v0, %v4230_v8 }
 0xe98   :  { %v1929_v2 = vsel %vm679_vm4, %v1919_v49, -inf }
 0xe99   :  { %1930 = vmax.xlane.f32.xlu0 %v1929_v2  ;;  %v1926_v3 = vsel %vm679_vm4, %v1918_v1, -inf }
 0xe9a   :  { %1927 = vmax.xlane.f32.xlu1 %v1926_v3 }
 0xefa   :  { %v3228_v52 = vpop.f32.mrb[10].mxu0 }
 0xefb   :  { %v1913_v4 = vmul.f32 0.35355338, %v3228_v52  ;;  %v1727_v6 = vpop.f32.mrb[11].mxu0 }
 0xefc   :  { %v1912_v7 = vmul.f32 0.35355338, %v1727_v6 }
 0xefd   :  { %v1921_v9 = vadd.f32 %v1913_v4, %v4228_v5 }
 0xefe   :  { %v1920_v11 = vadd.f32 %v1912_v7, %v4230_v8 }
 0xeff   :  { %v1935_v10 = vsel %vm679_vm4, %v1921_v9, -inf }
 0xf00   :  { %v3235_v12 = vpop.f32.mrb[20].mxu1  ;;  %1936 = vmax.xlane.f32.xlu0 %v1935_v10  ;;  %v1932_v17 = vsel %vm679_vm4, %v1920_v11, -inf }
 0xf01   :  { %v1915_v13 = vmul.f32 0.35355338, %v3235_v12  ;;  %v1814_v14 = vpop.f32.mrb[21].mxu1 }
 0xf02   :  { %v1914_v16 = vmul.f32 0.35355338, %v1814_v14 }
 0xf03   :  { %v1923_v18 = vadd.f32 %v1915_v13, %v4228_v5 }
 0xf04   :  { %1933 = vmax.xlane.f32.xlu0 %v1932_v17  ;;  %v3242_v19 = vpop.f32.mrb[20].mxu0  ;;  %v1922_v20 = vadd.f32 %v1914_v16, %v4230_v8 }
 0xf05   :  { %v1917_v21 = vmul.f32 0.35355338, %v3242_v19  ;;  %v1901_v22 = vpop.f32.mrb[21].mxu0  ;;  %v1941_v27 = vsel %vm679_vm4, %v1923_v18, -inf }
 0xf06   :  { %v1916_v25 = vmul.f32 0.35355338, %v1901_v22  ;;  %v1938_v26 = vsel %vm679_vm4, %v1922_v20, -inf }
 0xf07   :  { %1939 = vmax.xlane.f32.xlu1 %v1938_v26  ;;  %v1925_v28 = vadd.f32 %v1917_v21, %v4228_v5 }
 0xf08   :  { %1942 = vmax.xlane.f32.xlu0 %v1941_v27  ;;  %v4442_v29 = vadd.f32 %v1916_v25, %v4230_v8 }
 0xf09   :  { %v1947_v33 = vsel %vm679_vm4, %v1925_v28, -inf }
 0xf0a   :  { %v1944_v30 = vsel %vm679_vm4, %v4442_v29, -inf }
 0xf0b   :  { %1945 = vmax.xlane.f32.xlu1 %v1944_v30 }
 0xf0c   :  { %1948 = vmax.xlane.f32.xlu0 %v1947_v33 }
 0xf1c   :  { %3496 = vrot.lane.b32.xlu1 %v4389_v34, %s3897_s0 }
 0xf26   :  { %v1931_v46 = vpop.xlane.xlu0 %1930 }
 0xf27   :  { %v1951_v51 = vsub.f32 %v1919_v49, %v1931_v46  ;;  %v1928_v35 = vpop.xlane.xlu1 %1927 }
 0xf28   :  { %v1950_v36 = vsub.f32 %v1918_v1, %v1928_v35 }
 0xf29   :  { %v1960_v41 = vmul.f32 1.442695, %v1951_v51 }
 0xf2a   :  { %v1958_v5 = vmul.f32 1.442695, %v1950_v36 }
 0xf2b   :  { %3600 = vpow2.f32 %v1960_v41 }
 0xf2c   :  { %3602 = vpow2.f32 %v1958_v5 }
 0xf35   :  { %v3601_v8 = vpop.eup %3600 }
 0xf36   :  { %v1977_v38 = vsel %vm679_vm4, %v3601_v8, 0.0  ;;  %v3603_v39 = vpop.eup %3602 }
 0xf37   :  { %1978 = vadd.xlane.f32.xlu0 %v1977_v38  ;;  %v1974_v42 = vsel %vm679_vm4, %v3603_v39, 0.0 }
 0xf40   :  { %1975 = vadd.xlane.f32.xlu1 %v1974_v42 }
 0xf8d   :  { %v1937_v43 = vpop.xlane.xlu0 %1936 }
 0xf8e   :  { %v1953_v44 = vsub.f32 %v1921_v9, %v1937_v43 }
 0xf90   :  { %v1964_v45 = vmul.f32 1.442695, %v1953_v44 }
 0xf91   :  { %v1934_v34 = vpop.xlane.xlu0 %1933 }
 0xf92   :  { %3604 = vpow2.f32 %v1964_v45  ;;  %v1952_v47 = vsub.f32 %v1920_v11, %v1934_v34 }
 0xf94   :  { %v1962_v48 = vmul.f32 1.442695, %v1952_v47  ;;  %v1940_v50 = vpop.xlane.xlu1 %1939 }
 0xf95   :  { %v1954_v53 = vsub.f32 %v1922_v20, %v1940_v50  ;;  %v1943_v54 = vpop.xlane.xlu0 %1942 }
 0xf96   :  { %3606 = vpow2.f32 %v1962_v48  ;;  %v1955_v56 = vsub.f32 %v1923_v18, %v1943_v54 }
 0xf97   :  { %v1966_v57 = vmul.f32 1.442695, %v1954_v53 }
 0xf98   :  { %v1968_v58 = vmul.f32 1.442695, %v1955_v56  ;;  %v1946_v59 = vpop.xlane.xlu1 %1945 }
 0xf99   :  { %3608 = vpow2.f32 %v1966_v57  ;;  %v1949_v31 = vpop.xlane.xlu0 %1948  ;;  %v1956_v11 = vsub.f32 %v4442_v29, %v1946_v59 }
 0xf9a   :  { %3610 = vpow2.f32 %v1968_v58  ;;  %v1957_v32 = vsub.f32 %v1925_v28, %v1949_v31  ;;  %v3542_v58 = vld [vmem:[%s4585_s7 + $0x10] sm:$0xff]  }
 0xf9b   :  { %v1970_v12 = vmul.f32 1.442695, %v1956_v11 }
 0xf9c   :  { %v4451_v60 = vpop.eup %3604  ;;  %v1972_v61 = vmul.f32 1.442695, %v1957_v32  ;;  %v3497_v62 = vpop.permute.xlu1 %3496 }
 0xf9d   :  { %v3499_v63 = vunpack.i.h.bf16 %v3497_v62  ;;  %v3498_v0 = vunpack.i.l.bf16 %v3497_v62  ;;  %v1983_v49 = vsel %vm679_vm4, %v4451_v60, 0.0 }
 0xf9e   :  { %3612 = vpow2.f32 %v1972_v61  ;;  %1984 = vadd.xlane.f32.xlu0 %v1983_v49 }
 0xf9f   :  { %v3378_v1 = vpack.c.bf16 %v3499_v63, %v3498_v0  ;;  %3614 = vpow2.f32 %v1970_v12  ;;  %v3543_v63 = vld [vmem:[%s4585_s7 + $0x18] sm:$0xff]  }
 0xfa0   :  { %v3607_v2 = vpop.eup %3606 }
 0xfa1   :  { %3379 = vmatprep.subr.bf16.mxu1 %v3378_v1  ;;  %v1980_v3 = vsel %vm679_vm4, %v3607_v2, 0.0 }
 0xfa2   :  { %1981 = vadd.xlane.f32.xlu1 %v1980_v3  ;;  %3381 = vmatpush3.bf16.msra.mxu1 %v3378_v1 }
 0xfa3   :  { %v3609_v52 = vpop.eup %3608 }
 0xfa4   :  { %v3611_v4 = vpop.eup %3610  ;;  %v1986_v6 = vsel %vm679_vm4, %v3609_v52, 0.0 }
 0xfa5   :  { %v1989_v7 = vsel %vm679_vm4, %v3611_v4, 0.0 }
 0xfa6   :  { %1990 = vadd.xlane.f32.xlu0 %v1989_v7  ;;  %1987 = vadd.xlane.f32.xlu1 %v1986_v6 }
 0xfa8   :  { %v4458_v9 = vpop.eup %3612 }
 0xfa9   :  { %v1995_v10 = vsel %vm679_vm4, %v4458_v9, 0.0  ;;  %v3615_v16 = vpop.eup %3614 }
 0xfaa   :  { %1996 = vadd.xlane.f32.xlu0 %v1995_v10  ;;  %v1992_v21 = vsel %vm679_vm4, %v3615_v16, 0.0 }
 0xfb7   :  { %3506 = vrot.lane.b32.xlu1 %v4398_v37, %s3897_s0 }
 0xfc0   :  { %3501 = vrot.lane.b32.xlu0 %v4394_v55, %s3897_s0 }
 0xfc4   :  { %v1979_v13 = vpop.xlane.xlu0 %1978 }
 0xfc5   :  { %3616 = vrcp.f32 %v1979_v13 }
 0xfcd   :  { %v1976_v14 = vpop.xlane.xlu1 %1975 }
 0xfce   :  { %3618 = vrcp.f32 %v1976_v14 }
 0xfcf   :  { %v3617_v17 = vpop.eup %3616 }
 0xfd0   :  { %v2007_v20 = vmul.f32 %v3617_v17, %v3601_v8 }
 0xfd8   :  { %v3619_v18 = vpop.eup %3618 }
 0xfd9   :  { %v2006_v19 = vmul.f32 %v3619_v18, %v3603_v39 }
 0xfdb   :  { %1993 = vadd.xlane.f32.xlu1 %v1992_v21  ;;  %3247 = vmatprep.mubr.msk.f32.mxu1 %vm679_vm4, %v2006_v19 }
 0xfdc   :  { %3248 = vmatmul.mubr.msk.f32.vlgmr.msra.gmra.mrb[22].mxu1 %vm679_vm4, %v2007_v20  ;;  %v2979_v20 = vld [vmem:[#allocation11 + $0x1] ss:$0 sm:$0xff] }
 0xfec   :  { %3511 = vrot.lane.b32.xlu1 %v4402_v40, %s3897_s0 }
0x102b   :  { %v1985_v55 = vpop.xlane.xlu0 %1984 }
0x102f   :  { %v1982_v37 = vpop.xlane.xlu1 %1981 }
0x1030   :  { %3620 = vrcp.f32 %v1982_v37 }
0x1031   :  { %3622 = vrcp.f32 %v1985_v55 }
0x1033   :  { %v1991_v22 = vpop.xlane.xlu0 %1990  ;;  %v1988_v25 = vpop.xlane.xlu1 %1987 }
0x1034   :  { %3624 = vrcp.f32 %v1991_v22 }
0x1035   :  { %3626 = vrcp.f32 %v1988_v25 }
0x1037   :  { %v1997_v26 = vpop.xlane.xlu0 %1996  ;;  %v3507_v27 = vpop.permute.xlu1 %3506 }
0x1038   :  { %v3509_v28 = vunpack.i.h.bf16 %v3507_v27  ;;  %v3508_v29 = vunpack.i.l.bf16 %v3507_v27  ;;  %3628 = vrcp.f32 %v1997_v26 }
0x103a   :  { %v3621_v30 = vpop.eup %3620  ;;  %v3386_v33 = vpack.c.bf16 %v3509_v28, %v3508_v29 }
0x103b   :  { %v3502_v46 = vpop.permute.xlu0 %3501  ;;  %v2008_v51 = vmul.f32 %v3621_v30, %v3607_v2  ;;  %v3623_v40 = vpop.eup %3622 }
0x103c   :  { %v3504_v35 = vunpack.i.h.bf16 %v3502_v46  ;;  %v3503_v41 = vunpack.i.l.bf16 %v3502_v46  ;;  %3387 = vmatprep.subr.bf16.mxu0 %v3386_v33  ;;  %v2009_v42 = vmul.f32 %v3623_v40, %v4451_v60 }
0x103d   :  { %3254 = vmatprep.mubr.msk.f32.mxu1 %vm679_vm4, %v2008_v51  ;;  %3389 = vmatpush3.bf16.msra.mxu0 %v3386_v33 }
0x103e   :  { %v3625_v36 = vpop.eup %3624  ;;  %v3382_v5 = vpack.c.bf16 %v3504_v35, %v3503_v41  ;;  %3271 = vmatprep.subr.bf16.mxu0 %v3891_v15 }
0x103f   :  { %v3627_v8 = vpop.eup %3626  ;;  %v2011_v38 = vmul.f32 %v3625_v36, %v3611_v4 }
0x1040   :  { %3383 = vmatprep.subr.bf16.mxu1 %v3382_v5  ;;  %v2010_v39 = vmul.f32 %v3627_v8, %v3609_v52 }
0x1041   :  { %3385 = vmatpush3.bf16.msra.mxu1 %v3382_v5 }
0x1042   :  { %3261 = vmatprep.mubr.msk.f32.mxu0 %vm679_vm4, %v2010_v39  ;;  %v3629_v48 = vpop.eup %3628 }
0x1043   :  { %3262 = vmatmul.mubr.msk.f32.vlgmr.msra.gmra.mrb[22].mxu0 %vm679_vm4, %v2011_v38  ;;  %v2013_v54 = vmul.f32 %v3629_v48, %v4458_v9  ;;  %v3545_v38 = vld [vmem:[%s4589_s11 + $0x18] sm:$0xff]  }
0x1044   :  { %3255 = vmatmul.mubr.msk.f32.vlgmr.msra.gmra.mrb[24].mxu1 %vm679_vm4, %v2009_v42  ;;  %3275 = vmatprep.mubr.msk.bf16.mxu0 %vm3892_vm1, %v3891_v15 }
0x1045   :  { %3272 = vmatpush3.bf16.msra.mxu0 %v3542_v58 }
0x1046   :  { %3273 = vmatprep.subr.bf16.mxu0 %v3891_v15 }
0x1049   :  { %3274 = vmatpush3.bf16.msra.mxu0 %v3543_v63  ;;  %v3549_v63 = vld [vmem:[%s4591_s13 + $0x38] sm:$0xff]  }
0x104a   :  { %3287 = vmatprep.subr.bf16.mxu0 %v3891_v15 }
0x1068   :  { %v1994_v43 = vpop.xlane.xlu1 %1993 }
0x1069   :  { %3630 = vrcp.f32 %v1994_v43 }
0x106c   :  { %v3512_v44 = vpop.permute.xlu1 %3511 }
0x106d   :  { %v3514_v45 = vunpack.i.h.bf16 %v3512_v44  ;;  %v3513_v34 = vunpack.i.l.bf16 %v3512_v44 }
0x106f   :  { %v3390_v47 = vpack.c.bf16 %v3514_v45, %v3513_v34 }
0x1071   :  { %3391 = vmatprep.subr.bf16.mxu1 %v3390_v47 }
0x1072   :  { %3393 = vmatpush3.bf16.msra.mxu1 %v3390_v47 }
0x1073   :  { %v3631_v50 = vpop.eup %3630  ;;  %3279 = vmatprep.subr.bf16.mxu1 %v3891_v15 }
0x1074   :  { %v2012_v53 = vmul.f32 %v3631_v50, %v3615_v16  ;;  %v2983_v50 = vld [vmem:[#allocation13 + $0x1] ss:$0 sm:$0xff] }
0x1076   :  { %3268 = vmatprep.mubr.msk.f32.mxu1 %vm679_vm4, %v2012_v53 }
0x1077   :  { %3269 = vmatmul.mubr.msk.f32.vlgmr.msra.gmra.mrb[26].mxu1 %vm679_vm4, %v2013_v54 }
0x1078   :  { %3283 = vmatprep.mubr.msk.bf16.mxu1 %vm3892_vm1, %v3891_v15 }
0x10af   :  { %v3249_v56 = vpop.f32.mrb[22].mxu1 }
0x10b0   :  { %v2092_v57 = vpop.f32.mrb[23].mxu1 }
0x1116   :  { %v3263_v59 = vpop.f32.mrb[22].mxu0 }
0x1117   :  { %v2266_v31 = vpop.f32.mrb[23].mxu0  ;;  %v3256_v32 = vpop.f32.mrb[24].mxu1 }
0x1118   :  { %v3520_v60 = vpack.i.bf16 %v3263_v59, %v2266_v31  ;;  %v2179_v61 = vpop.f32.mrb[25].mxu1 }
0x1119   :  { %v3515_v62 = vpack.i.bf16 %v3256_v32, %v2179_v61  ;;  %v3547_v61 = vld [vmem:[%s4591_s13 + $0x28] sm:$0xff]  }
0x111a   :  { %3521 = vrot.lane.b32.xlu0 %v3520_v60, %s3884_s21  ;;  %v3546_v60 = vld [vmem:[%s4591_s13 + $0x20] sm:$0xff]  }
0x111b   :  { %3516 = vrot.lane.b32.xlu1 %v3515_v62, %s4610_s23  ;;  %v3548_v62 = vld [vmem:[%s4591_s13 + $0x30] sm:$0xff]  }
0x114a   :  { %v3270_v0 = vpop.f32.mrb[26].mxu1 }
0x114b   :  { %v2353_v49 = vpop.f32.mrb[27].mxu1 }
0x114c   :  { %v3525_v1 = vpack.i.bf16 %v3270_v0, %v2353_v49  ;;  %v2989_v0 = vld [vmem:[#allocation16 + $0x1] ss:$0 sm:$0xff] }
0x114e   :  { %3526 = vrot.lane.b32.xlu1 %v3525_v1, %s3898_s24 }
0x118c   :  { %v3522_v4 = vpop.permute.xlu0 %3521 }
0x118d   :  { %v3517_v2 = vpop.permute.xlu1 %3516  ;;  %v3524_v9 = vunpack.i.h.bf16 %v3522_v4  ;;  %v3523_v10 = vunpack.i.l.bf16 %v3522_v4 }
0x118e   :  { %v3519_v3 = vunpack.i.h.bf16 %v3517_v2  ;;  %v3518_v52 = vunpack.i.l.bf16 %v3517_v2 }
0x1190   :  { %v2387_v6 = vsel %vm318_vm2, %v3249_v56, %v3519_v3  ;;  %v2386_v7 = vsel %vm318_vm2, %v2092_v57, %v3518_v52  ;;  %v2984_v57 = vld [vmem:[#allocation14 + $0x1] ss:$0 sm:$0xff] }
0x1191   :  { %v2388_v14 = vsel %vm679_vm4, %v2386_v7, %v3523_v10  ;;  %v2389_v16 = vsel %vm679_vm4, %v2387_v6, %v3524_v9 }
0x11c0   :  { %v3527_v11 = vpop.permute.xlu1 %3526 }
0x11c1   :  { %v3529_v12 = vunpack.i.h.bf16 %v3527_v11  ;;  %v3528_v13 = vunpack.i.l.bf16 %v3527_v11 }
0x11c3   :  { %v2391_v17 = vsel %vm1144_vm5, %v2389_v16, %v3529_v12  ;;  %v2390_v18 = vsel %vm1144_vm5, %v2388_v14, %v3528_v13 }
0x11c4   :  { %v2392_v19 = vpack.c.bf16 %v2391_v17, %v2390_v18 }
0x11c6   :  { %3276 = vmatmul.mubr.msk.bf16.vlgmr.msra.gmra.mrb[24].mxu0 %vm186_vm0, %v2392_v19 }
0x11c7   :  { %3295 = vmatprep.mubr.msk.bf16.mxu0 %vm3892_vm1, %v3891_v15  ;;  %3288 = vmatpush3.bf16.msra.mxu0 %v3546_v60 }
0x11c8   :  { %3289 = vmatprep.subr.bf16.mxu0 %v3891_v15 }
0x11cb   :  { %3290 = vmatpush3.bf16.msra.mxu0 %v3547_v61  ;;  %v3011_v61 = vld [vmem:[%s4594_s16 + $0x1] ss:$0 sm:$0xff] }
0x11cc   :  { %3291 = vmatprep.subr.bf16.mxu0 %v3891_v15 }
0x11cf   :  { %3292 = vmatpush3.bf16.msra.mxu0 %v3548_v62 }
0x11d0   :  { %3293 = vmatprep.subr.bf16.mxu0 %v3891_v15 }
0x11d3   :  { %3294 = vmatpush3.bf16.msra.mxu0 %v3549_v63 }
0x1299   :  { %v2455_v21 = vpop.f32.mrb[24].mxu0 }
0x129a   :  { %v2456_v55 = vadd.f32 %v2979_v20, %v2455_v21  ;;  %v3277_v37 = vpop.f32.mrb[25].mxu0 }
0x129b   :  { %v2458_v22 = vpop.f32.mrb[26].mxu0 }
0x129c   :  { %v2459_v25 = vadd.f32 %v2979_v20, %v2458_v22  ;;  %v3278_v26 = vpop.f32.mrb[27].mxu0  ;;  %v2462_v27 = vadd.f32 %v2456_v55, %v4375_v23 }
0x129e   :  { %v2468_v28 = vsel %vm186_vm0, %v2462_v27, 0.0  ;;  %v2463_v29 = vadd.f32 %v2459_v25, %v4377_v24  ;;  %v3544_v24 = vld [vmem:[%s4589_s11 + $0x10] sm:$0xff]  }
0x129f   :  { %2469 = vadd.xlane.f32.xlu0 %v2468_v28  ;;  %3280 = vmatpush3.bf16.msra.mxu1 %v3544_v24 }
0x12a0   :  { %v2471_v30 = vsel %vm186_vm0, %v2463_v29, 0.0  ;;  %3281 = vmatprep.subr.bf16.mxu1 %v3891_v15 }
0x12a1   :  { %2472 = vadd.xlane.f32.xlu1 %v2471_v30 }
0x12a3   :  { %3282 = vmatpush3.bf16.msra.mxu1 %v3545_v38 }
0x132c   :  { %v2470_v33 = vpop.xlane.xlu0 %2469 }
0x132d   :  { %v2474_v46 = vmul.f32 0.03125, %v2470_v33 }
0x132e   :  { %v2473_v51 = vpop.xlane.xlu1 %2472 }
0x132f   :  { %v2476_v35 = vsub.f32 %v2462_v27, %v2474_v46  ;;  %v2475_v41 = vmul.f32 0.03125, %v2473_v51  ;;  %v3002_v27 = vld [vmem:[%s4592_s14 + $0x1] ss:$0 sm:$0xff] }
0x1331   :  { %v2477_v40 = vsub.f32 %v2463_v29, %v2475_v41  ;;  %v2478_v36 = vmul.f32 %v2476_v35, %v2476_v35 }
0x1333   :  { %v2480_v5 = vsel %vm186_vm0, %v2478_v36, 0.0  ;;  %v2479_v8 = vmul.f32 %v2477_v40, %v2477_v40 }
0x1334   :  { %2481 = vadd.xlane.f32.xlu0 %v2480_v5 }
0x1335   :  { %v2483_v23 = vsel %vm186_vm0, %v2479_v8, 0.0 }
0x1338   :  { %2484 = vadd.xlane.f32.xlu0 %v2483_v23 }
0x13c1   :  { %v2482_v39 = vpop.xlane.xlu0 %2481 }
0x13c2   :  { %v2486_v42 = vmul.f32 0.03125, %v2482_v39 }
0x13c4   :  { %v2488_v43 = vadd.f32 1e-12, %v2486_v42 }
0x13c5   :  { %v2485_v44 = vpop.xlane.xlu0 %2484 }
0x13c6   :  { %3632 = vrsqrt.f32 %v2488_v43  ;;  %v2487_v45 = vmul.f32 0.03125, %v2485_v44 }
0x13c8   :  { %v2489_v34 = vadd.f32 1e-12, %v2487_v45 }
0x13ca   :  { %3634 = vrsqrt.f32 %v2489_v34  ;;  %v3899_v34 = vmov 0.0|0.0  }
0x13cb   :  { %3394 = vmatprep.subr.bf16.mxu1 %v3899_v34 }
0x13d0   :  { %v3633_v47 = vpop.eup %3632 }
0x13d1   :  { %v2492_v48 = vmul.f32 %v3633_v47, %v2476_v35 }
0x13d3   :  { %v2500_v54 = vmul.f32 %v2983_v50, %v2492_v48 }
0x13d4   :  { %v3635_v53 = vpop.eup %3634 }
0x13d5   :  { %v2493_v56 = vmul.f32 %v3635_v53, %v2477_v40  ;;  %v2508_v59 = vadd.f32 %v2984_v57, %v2500_v54 }
0x13d7   :  { %v2501_v58 = vmul.f32 %v2983_v50, %v2493_v56 }
0x13d9   :  { %v2509_v31 = vadd.f32 %v2984_v57, %v2501_v58  ;;  %v3010_v58 = vld [vmem:[%s4593_s15 + $0x1] ss:$0 sm:$0xff] }
0x13db   :  { %v2510_v32 = vpack.c.bf16 %v2509_v31, %v2508_v59 }
0x13dd   :  { %3284 = vmatmul.mubr.msk.bf16.vlgmr.msra.gmra.mrb[28].mxu1 %vm186_vm0, %v2510_v32 }
0x13de   :  { %3303 = vmatprep.mubr.msk.f32.mxu1 %vm3892_vm1, %v3891_v15 }
0x14b0   :  { %v2573_v49 = vpop.f32.mrb[28].mxu1 }
0x14b1   :  { %v2574_v1 = vadd.f32 %v2989_v0, %v2573_v49  ;;  %v3285_v2 = vpop.f32.mrb[29].mxu1 }
0x14b2   :  { %v2576_v3 = vpop.f32.mrb[30].mxu1  ;;  %v3550_v2 = vld [vmem:[%s4595_s17] sm:$0xff]  }
0x14b3   :  { %v2582_v52 = vmul.f32 0.044715, %v2574_v1  ;;  %v2577_v4 = vadd.f32 %v2989_v0, %v2576_v3  ;;  %v3286_v6 = vpop.f32.mrb[31].mxu1  ;;  %v2580_v21 = vmul.f32 0.5, %v2574_v1  ;;  %v3551_v3 = vld [vmem:[%s4595_s17 + $0x8] sm:$0xff]   ;;  %s3844_s17 = scalar_lea.vmem %s2883_s10, 32 }
0x14b4   :  { %p3845_p2 = scmp.ne.s32.totalorder %s2883_s10, %s3844_s17  ;;  %p3850_p4 = scmp.lt.s32.totalorder %s3844_s17, %s3844_s17 }
0x14b5   :  { %v2584_v7 = vmul.f32 %v2582_v52, %v2574_v1  ;;  %v2583_v9 = vmul.f32 0.044715, %v2577_v4  ;;  %v2581_v55 = vmul.f32 0.5, %v2577_v4 }
0x14b6   :  { %p3851_p5 = por %p3850_p4, %p3849_p3 }
0x14b7   :  { %v2586_v10 = vmul.f32 %v2584_v7, %v2574_v1  ;;  %v2585_v11 = vmul.f32 %v2583_v9, %v2577_v4  ;;  %v3013_v7 = vld [vmem:[%s4596_s18] ss:$0 sm:$0xff] }
0x14b8   :  { %p3852_p6 = pnand %p3851_p5, %p3845_p2 }
0x14b9   :  { %v2588_v12 = vadd.f32 %v2586_v10, %v2574_v1  ;;  %v2587_v13 = vmul.f32 %v2585_v11, %v2577_v4  ;;  %v2732_v1 = vld [vmem:[#allocation7] sm:$0x3] }
0x14bb   :  { %v2590_v14 = vmul.f32 0.7978846, %v2588_v12  ;;  %v2589_v16 = vadd.f32 %v2587_v13, %v2577_v4 }
0x14bd   :  { %3636 = vtanh.f32 %v2590_v14  ;;  %v2591_v17 = vmul.f32 0.7978846, %v2589_v16 }
0x14bf   :  { %3638 = vtanh.f32 %v2591_v17 }
0x14c7   :  { %v3637_v18 = vpop.eup %3636 }
0x14c8   :  { %v2594_v19 = vadd.f32 1.0, %v3637_v18 }
0x14c9   :  { %v3639_v20 = vpop.eup %3638 }
0x14ca   :  { %v2595_v37 = vadd.f32 1.0, %v3639_v20  ;;  %v2596_v22 = vmul.f32 %v2594_v19, %v2580_v21 }
0x14cc   :  { %v2597_v25 = vmul.f32 %v2595_v37, %v2581_v55 }
0x14ce   :  { %v2598_v26 = vpack.c.bf16 %v2597_v25, %v2596_v22 }
0x14d0   :  { %3296 = vmatmul.mubr.msk.bf16.vlgmr.msra.gmra.mrb[28].mxu0 %vm1387_vm6, %v2598_v26 }
0x15a3   :  { %v2677_v28 = vpop.f32.mrb[28].mxu0 }
0x15a4   :  { %v2678_v29 = vadd.f32 %v3002_v27, %v2677_v28  ;;  %v3297_v30 = vpop.f32.mrb[29].mxu0 }
0x15a5   :  { %v2680_v33 = vpop.f32.mrb[30].mxu0 }
0x15a6   :  { %v2681_v46 = vadd.f32 %v3002_v27, %v2680_v33  ;;  %v3298_v51 = vpop.f32.mrb[31].mxu0  ;;  %v2684_v35 = vadd.f32 %v2678_v29, %v2508_v59 }
0x15a8   :  { %v2690_v41 = vsel %vm186_vm0, %v2684_v35, 0.0  ;;  %v2685_v40 = vadd.f32 %v2681_v46, %v2509_v31 }
0x15a9   :  { %2691 = vadd.xlane.f32.xlu0 %v2690_v41 }
0x15aa   :  { %v2693_v36 = vsel %vm186_vm0, %v2685_v40, 0.0 }
0x15ab   :  { %2694 = vadd.xlane.f32.xlu1 %v2693_v36 }
0x1636   :  { %v2692_v5 = vpop.xlane.xlu0 %2691 }
0x1637   :  { %v2696_v8 = vmul.f32 0.03125, %v2692_v5 }
0x1638   :  { %v2695_v23 = vpop.xlane.xlu1 %2694 }
0x1639   :  { %v2698_v24 = vsub.f32 %v2684_v35, %v2696_v8  ;;  %v2697_v38 = vmul.f32 0.03125, %v2695_v23 }
0x163b   :  { %v2699_v39 = vsub.f32 %v2685_v40, %v2697_v38  ;;  %v2700_v42 = vmul.f32 %v2698_v24, %v2698_v24 }
0x163d   :  { %v2702_v43 = vsel %vm186_vm0, %v2700_v42, 0.0  ;;  %v2701_v44 = vmul.f32 %v2699_v39, %v2699_v39 }
0x163e   :  { %2703 = vadd.xlane.f32.xlu0 %v2702_v43 }
0x163f   :  { %v2705_v45 = vsel %vm186_vm0, %v2701_v44, 0.0 }
0x1640   :  { %2706 = vadd.xlane.f32.xlu1 %v2705_v45 }
0x16cb   :  { %v2704_v47 = vpop.xlane.xlu0 %2703 }
0x16cc   :  { %v2708_v48 = vmul.f32 0.03125, %v2704_v47 }
0x16cd   :  { %v2707_v50 = vpop.xlane.xlu1 %2706 }
0x16ce   :  { %v2710_v53 = vadd.f32 1e-12, %v2708_v48  ;;  %v2709_v54 = vmul.f32 0.03125, %v2707_v50 }
0x16d0   :  { %3640 = vrsqrt.f32 %v2710_v53  ;;  %v2711_v56 = vadd.f32 1e-12, %v2709_v54 }
0x16d2   :  { %3642 = vrsqrt.f32 %v2711_v56 }
0x16da   :  { %v3641_v57 = vpop.eup %3640 }
0x16db   :  { %v2714_v59 = vmul.f32 %v3641_v57, %v2698_v24 }
0x16dc   :  { %v3643_v31 = vpop.eup %3642 }
0x16dd   :  { %v2715_v32 = vmul.f32 %v3643_v31, %v2699_v39  ;;  %v2722_v60 = vmul.f32 %v3010_v58, %v2714_v59 }
0x16df   :  { %v2723_v62 = vmul.f32 %v3010_v58, %v2715_v32  ;;  %v2730_v63 = vadd.f32 %v3011_v61, %v2722_v60 }
0x16e1   :  { %v2731_v0 = vadd.f32 %v3011_v61, %v2723_v62 }
0x16e3   :  { %v3395_v49 = vpack.c.bf16 %v2731_v0, %v2730_v63 }
0x16e5   :  { %3396 = vmatpush3.bf16.msra.mxu1 %v3395_v49 }
0x16e6   :  { %3306 = vmatprep.subr.bf16.mxu1 %v3891_v15 }
0x16e8   :  { %3304 = vmatmul.mubr.msk.f32.vlgmr.msra.gmra.mrb[32].mxu1 %vm679_vm4, %v2732_v1 }
0x16e9   :  { %3307 = vmatpush3.bf16.msra.mxu1 %v3550_v2  ;;  %3310 = vmatprep.mubr.msk.bf16.mxu1 %vm3892_vm1, %v3891_v15 }
0x16ea   :  { %3308 = vmatprep.subr.bf16.mxu1 %v3891_v15 }
0x16ed   :  { %3309 = vmatpush3.bf16.msra.mxu1 %v3551_v3 }
0x17bb   :  { %v2802_v52 = vpop.f32.mrb[32].mxu1 }
0x17bc   :  { %v2806_v4 = vpack.c.bf16 %v2802_v52, %v2802_v52  ;;  %v3305_v6 = vpop.f32.mrb[33].mxu1 }
0x17be   :  { %3311 = vmatmul.mubr.msk.bf16.vlgmr.msra.gmra.mrb[36].mxu1 %vm186_vm0, %v2806_v4 }
0x1891   :  { %v2867_v9 = vpop.f32.mrb[36].mxu1 }
0x1892   :  { %v2868_v10 = vadd.f32 %v3013_v7, %v2867_v9  ;;  %v3312_v11 = vpop.f32.mrb[37].mxu1 }
0x1893   :  { %v2870_v12 = vpop.f32.mrb[38].mxu1 }
0x1894   :  { %3644 = vtanh.f32 %v2868_v10  ;;  %v3313_v15 = vpop.f32.mrb[39].mxu1 }
0x189e   :  { %v3645_v13 = vpop.eup %3644 }
0x189f   :  { %2875 = vst.msk [vmem:[#allocation17] sm:$0x3] %vm2874_vm7, %v3645_v13 }
0x18a0   :  { %3855 = shalt.err (!%p3852_p6)
}
0x18a1   :  { %s3856_s29 = scalar_lea.hbm %s4597_s19, 32 }
0x18a2   :  { %p3857_p7 = scmp.ne.s32.totalorder %s4597_s19, %s3856_s29  ;;  %p3860_p8 = scmp.lt.u32.totalorder %s3856_s29, %s4597_s19 }
0x18a4   :  { %p3862_p9 = pnand %p3860_p8, %p3857_p7 }
0x18a6   :  { %3865 = shalt.err (!%p3862_p9)
}
0x18a7   :  { %2885 = dma.vmem_to_hbm [thread:$0]  %s2883_s10, 32, %s4597_s19, [#allocation4]  }
0x18a8   :  { %3876 = dma.done.wait [#allocation4], 32  }
0x18a9   :  { %3877 = vsyncadd [#allocation4], 4294967264 }
0x18aa   :  { %2889 = vsyncpa [#allocation3], 1 }
0x18ab   :  { %2890 = vsyncpa [#allocation6], 1 }
0x18ac   :  { %2891 = vsyncpa [#allocation9], 1 }
0x18ad   :  { %2892 = vsyncpa [#allocation12], 1 }
0x18ae   :  { %2893 = vsyncpa [#allocation15], 1 }
0x18af   :  { %2894 = vsyncpa [#allocation4], 1 }

</bundles_post_ra>
